<compile_context>
chip_gen: v5e
topology: v5e:2x2
jax: 0.10.0
libtpu: 0.0.40
codegen_flags: <defaults>
</compile_context>

<pallas_src>
import jax
import jax.numpy as jnp
from jax.experimental import pallas as pl
from jax.experimental.pallas import tpu as pltpu

EMBEDDING_SIZE = 32
N_CLINIC = 10
N_GENETIC = 300            # selected_genetic == '' branch of the module
N_FEAT = N_CLINIC + N_GENETIC          # 310
N_OUT = 4
H_DIM = N_CLINIC * N_CLINIC + N_CLINIC * N_GENETIC + N_GENETIC * N_GENETIC + 1  # 93101
XPAD = 384                 # 310 features + survival + const-1, padded to 3*128 lanes


def _round_up(n, m):
    return (n + m - 1) // m * m


def fused_forward_kernel(x_ref, w2_ref, o_ref):
    """out[b, o] = x[b]^T M_o x[b]   (survival & bias already folded into M).

    x_ref : (Bt, XPAD)            lane-dense padded feature rows
    w2_ref: (XPAD, N_OUT*XPAD)    W2[i, o*XPAD + j] = M[o, i, j]
    o_ref : (Bt, N_OUT)
    """
    x = x_ref[...]                                                    # (Bt, 384)
    # MXU: one matmul produces t[b, o*XPAD + j] = sum_i x[b,i] * M[o,i,j]
    t = jnp.dot(x, w2_ref[...], preferred_element_type=jnp.float32)   # (Bt, 1536)
    # VPU multiply + XLU lane-reduce per output column (static, lane-aligned slices).
    for o in range(N_OUT):
        sl = t[:, o * XPAD:(o + 1) * XPAD]                            # (Bt, 384)
        o_ref[:, o:o + 1] = jnp.sum(sl * x, axis=1, keepdims=True)    # (Bt, 1)


def model_forward(clinic, genetic, survival_time, params, *, batch_tile=256):
    B = clinic.shape[0]
    f32 = jnp.float32

    # ---------------- batch-independent parameter fold (runs once, wrapper-side) ----
    pc = params['clinic_parameter'].astype(f32)      # (10, E)
    pg = params['genetic_parameter'].astype(f32)     # (300, E)
    W = params['out_w'].astype(f32)                  # (4, 93101)  nn.Linear layout
    bias = params['out_b'].astype(f32)               # (4,)

    p_all = jnp.concatenate([pc, pg], axis=0)        # (310, E)
    G = p_all @ p_all.T                              # (310, 310) parameter Gram

    # Weight blocks exactly matching torch cat([cc.view, cg.view, gg.view, survival]).
    Wcc = W[:, :100].reshape(N_OUT, N_CLINIC, N_CLINIC)
    Wcg = W[:, 100:3100].reshape(N_OUT, N_CLINIC, N_GENETIC)
    Wgg = W[:, 3100:93100].reshape(N_OUT, N_GENETIC, N_GENETIC)
    w_surv = W[:, 93100]                             # (4,) last column -> survival

    M = jnp.zeros((N_OUT, XPAD, XPAD), f32)
    M = M.at[:, :10, :10].set(G[:10, :10][None] * Wcc)
    M = M.at[:, :10, 10:310].set(G[:10, 10:][None] * Wcg)
    M = M.at[:, 10:310, 10:310].set(G[10:, 10:][None] * Wgg)   # no symmetrization: kept as-is
    M = M.at[:, 311, 310].set(w_surv)                # const(1) * survival * w_surv[o]
    M = M.at[:, 311, 311].set(bias)                  # const(1) * const(1) * bias[o]
    W2 = jnp.transpose(M, (1, 0, 2)).reshape(XPAD, N_OUT * XPAD)   # (384, 1536)

    # ---------------- per-sample features: lane-dense, zero-padded to XPAD -----------
    x = jnp.zeros((B, XPAD), f32)
    x = x.at[:, :10].set(clinic.reshape(B, N_CLINIC).astype(f32))
    x = x.at[:, 10:310].set(genetic.reshape(B, N_GENETIC).astype(f32))
    x = x.at[:, 310].set(survival_time.astype(f32))
    x = x.at[:, 311].set(1.0)

    Bt = min(batch_tile, _round_up(B, 8))            # multiple of 8 (sublane-aligned)
    B_pad = _round_up(B, Bt)
    if B_pad != B:
        x = jnp.pad(x, ((0, B_pad - B), (0, 0)))     # padded rows are all-zero -> out 0

    out = pl.pallas_call(
        fused_forward_kernel,
        out_shape=jax.ShapeDtypeStruct((B_pad, N_OUT), f32),
        grid_spec=pltpu.PrefetchScalarGridSpec(
            num_scalar_prefetch=0,
            grid=(B_pad // Bt,),
            in_specs=[
                pl.BlockSpec((Bt, XPAD), lambda i: (i, 0)),             # batch tile
                pl.BlockSpec((XPAD, N_OUT * XPAD), lambda i: (0, 0)),   # folded weights (resident)
            ],
            out_specs=pl.BlockSpec((Bt, N_OUT), lambda i: (i, 0)),
        ),
        compiler_params=pltpu.CompilerParams(
            dimension_semantics=("parallel",)),
    )(x, W2)
    return out[:B]


if __name__ == "__main__":
    B = 2
    key = jax.random.PRNGKey(0)
    k1, k2, k3, k4, k5 = jax.random.split(key, 5)

    clinic = jax.random.normal(k1, (B, N_CLINIC), jnp.float32)
    genetic = jax.random.normal(k2, (B, N_GENETIC), jnp.float32)
    survival_time = jax.random.uniform(k3, (B,), jnp.float32, 0.0, 10.0)

    # Module uses torch.ones for the embedding parameters; nn.Linear gets uniform init.
    bound = 1.0 / (H_DIM ** 0.5)
    params = {
        'clinic_parameter': jnp.ones((N_CLINIC, EMBEDDING_SIZE), jnp.float32),
        'genetic_parameter': jnp.ones((N_GENETIC, EMBEDDING_SIZE), jnp.float32),
        'out_w': jax.random.uniform(k4, (N_OUT, H_DIM), jnp.float32, -bound, bound),
        'out_b': jax.random.uniform(k5, (N_OUT,), jnp.float32, -bound, bound),
    }

    out = jax.jit(model_forward)(clinic, genetic, survival_time, params)
    out = jax.block_until_ready(out)

    # Pure-JAX reference matching the torch forward literally.
    ce = clinic[:, :, None] * params['clinic_parameter'][None]
    ge = genetic[:, :, None] * params['genetic_parameter'][None]
    cc_r = jnp.einsum('bie,bje->bij', ce, ce).reshape(B, -1)
    cg_r = jnp.einsum('bie,bje->bij', ce, ge).reshape(B, -1)
    gg_r = jnp.einsum('bie,bje->bij', ge, ge).reshape(B, -1)
    h_r = jnp.concatenate([cc_r, cg_r, gg_r, survival_time[:, None]], axis=1)
    ref = h_r @ params['out_w'].T + params['out_b'][None]

    assert out.shape == (B, N_OUT)
    assert jnp.allclose(out, ref, rtol=1e-2, atol=1e-2), (out, ref)
    print("KERNEL_OK")
</pallas_src>

<mosaic_0001>
module attributes {stable_mosaic.version = 11 : i64} {
  func.func @fused_forward_kernel(%arg0: i32, %arg1: memref<8x384xf32, #tpu.memory_space<vmem>>, %arg2: memref<384x1536xf32, #tpu.memory_space<vmem>>, %arg3: memref<8x4xf32, #tpu.memory_space<vmem>>) attributes {dimension_semantics = [#tpu.dimension_semantics<parallel>], iteration_bounds = array<i64: 1>, scalar_prefetch = 0 : i64, scratch_operands = 0 : i64, tpu.core_type = #tpu.core_type<tc>, window_params = [{transform_indices = @transform_0, window_bounds = array<i64: 8, 384>}, {pipeline_mode = #tpu.pipeline_mode<synchronous>, transform_indices = @transform_1, window_bounds = array<i64: 384, 1536>}, {transform_indices = @transform_2, window_bounds = array<i64: 8, 4>}]} {
    %c0 = arith.constant 0 : index
    %c0_0 = arith.constant 0 : index
    %0 = vector.load %arg1[%c0, %c0_0] : memref<8x384xf32, #tpu.memory_space<vmem>>, vector<8x384xf32>
    %c0_1 = arith.constant 0 : index
    %c0_2 = arith.constant 0 : index
    %1 = vector.load %arg2[%c0_1, %c0_2] : memref<384x1536xf32, #tpu.memory_space<vmem>>, vector<384x1536xf32>
    %cst = arith.constant dense<0.000000e+00> : vector<8x1536xf32>
    %2 = tpu.matmul %0, %1, %cst {dimension_numbers = #tpu.dot_dimension_numbers<[1], [0], [0], [1], [0, 0, 1, 1], [], []>} : vector<8x384xf32>, vector<384x1536xf32>, vector<8x1536xf32> -> vector<8x1536xf32>
    %3 = vector.extract_strided_slice %2 {offsets = [0, 0], sizes = [8, 384], strides = [1, 1]} : vector<8x1536xf32> to vector<8x384xf32>
    %4 = arith.mulf %3, %0 : vector<8x384xf32>
    %cst_3 = arith.constant dense<0.000000e+00> : vector<8xf32>
    %5 = vector.multi_reduction <add>, %4, %cst_3 [1] : vector<8x384xf32> to vector<8xf32>
    %6 = vector.shape_cast %5 : vector<8xf32> to vector<8x1xf32>
    %c0_4 = arith.constant 0 : index
    %c0_5 = arith.constant 0 : index
    %7 = vector.load %arg3[%c0_4, %c0_5] : memref<8x4xf32, #tpu.memory_space<vmem>>, vector<8x1xf32>
    tpu.vector_store %arg3[%c0_4, %c0_5], %6 {strides = array<i32>} : memref<8x4xf32, #tpu.memory_space<vmem>>, vector<8x1xf32>,
    %8 = vector.extract_strided_slice %2 {offsets = [0, 384], sizes = [8, 384], strides = [1, 1]} : vector<8x1536xf32> to vector<8x384xf32>
    %9 = arith.mulf %8, %0 : vector<8x384xf32>
    %cst_6 = arith.constant dense<0.000000e+00> : vector<8xf32>
    %10 = vector.multi_reduction <add>, %9, %cst_6 [1] : vector<8x384xf32> to vector<8xf32>
    %11 = vector.shape_cast %10 : vector<8xf32> to vector<8x1xf32>
    %c0_7 = arith.constant 0 : index
    %c1 = arith.constant 1 : index
    %12 = vector.load %arg3[%c0_7, %c1] : memref<8x4xf32, #tpu.memory_space<vmem>>, vector<8x1xf32>
    tpu.vector_store %arg3[%c0_7, %c1], %11 {strides = array<i32>} : memref<8x4xf32, #tpu.memory_space<vmem>>, vector<8x1xf32>,
    %13 = vector.extract_strided_slice %2 {offsets = [0, 768], sizes = [8, 384], strides = [1, 1]} : vector<8x1536xf32> to vector<8x384xf32>
    %14 = arith.mulf %13, %0 : vector<8x384xf32>
    %cst_8 = arith.constant dense<0.000000e+00> : vector<8xf32>
    %15 = vector.multi_reduction <add>, %14, %cst_8 [1] : vector<8x384xf32> to vector<8xf32>
    %16 = vector.shape_cast %15 : vector<8xf32> to vector<8x1xf32>
    %c0_9 = arith.constant 0 : index
    %c2 = arith.constant 2 : index
    %17 = vector.load %arg3[%c0_9, %c2] : memref<8x4xf32, #tpu.memory_space<vmem>>, vector<8x1xf32>
    tpu.vector_store %arg3[%c0_9, %c2], %16 {strides = array<i32>} : memref<8x4xf32, #tpu.memory_space<vmem>>, vector<8x1xf32>,
    %18 = vector.extract_strided_slice %2 {offsets = [0, 1152], sizes = [8, 384], strides = [1, 1]} : vector<8x1536xf32> to vector<8x384xf32>
    %19 = arith.mulf %18, %0 : vector<8x384xf32>
    %cst_10 = arith.constant dense<0.000000e+00> : vector<8xf32>
    %20 = vector.multi_reduction <add>, %19, %cst_10 [1] : vector<8x384xf32> to vector<8xf32>
    %21 = vector.shape_cast %20 : vector<8xf32> to vector<8x1xf32>
    %c0_11 = arith.constant 0 : index
    %c3 = arith.constant 3 : index
    %22 = vector.load %arg3[%c0_11, %c3] : memref<8x4xf32, #tpu.memory_space<vmem>>, vector<8x1xf32>
    tpu.vector_store %arg3[%c0_11, %c3], %21 {strides = array<i32>} : memref<8x4xf32, #tpu.memory_space<vmem>>, vector<8x1xf32>,
    return
  }
  func.func @transform_0(%arg0: i32) -> (i32, i32) {
    %c0_i32 = arith.constant 0 : i32
    %c0_i32_0 = arith.constant 0 : i32
    return %arg0, %c0_i32 : i32, i32
  }
  func.func @transform_1(%arg0: i32) -> (i32, i32) {
    %c0_i32 = arith.constant 0 : i32
    %c0_i32_0 = arith.constant 0 : i32
    %c0_i32_1 = arith.constant 0 : i32
    return %c0_i32, %c0_i32_0 : i32, i32
  }
  func.func @transform_2(%arg0: i32) -> (i32, i32) {
    %c0_i32 = arith.constant 0 : i32
    %c0_i32_0 = arith.constant 0 : i32
    return %arg0, %c0_i32 : i32, i32
  }
}

</mosaic_0001>

<bundles_post_ra>
// kernel: model_forward.1
= control target key start
LH: loop header
LB: loop body
LE: loop exit
PB: predicated region body
PF: predicated region fallthrough
CT: control target
= control target key end

     0   :  { %vm1317_vm0 = vcmask 7168   ;;  %vm1326_vm1 = vcmask 15368   ;;  %vm1335_vm2 = vcmask 23568   ;;  %vm1344_vm3 = vcmask 31768   ;;  %s3192_s1 = inlined_call_operand.vmem [shape: f32[384,1536], index: 1, kind: input, shape index: {}]   ;;  %s3193_s0 = inlined_call_operand.vmem [shape: f32[8,384], index: 0, kind: input, shape index: {}]   ;;  %s3194_s2 = inlined_call_operand.vmem [shape: f32[8,4], index: 2, kind: output, shape index: {}]  }
   0x1   :  { %v194_v0 = vld [vmem:[%s3192_s1 + $0x5a0] sm:$0xff]  ;;  %v195_v5 = vld [vmem:[%s3192_s1 + $0x5a8] sm:$0xff]  ;;  %v196_v63 = vld [vmem:[%s3192_s1 + $0x5b0] sm:$0xff] }
   0x2   :  { %v578_v1 = vld [vmem:[%s3192_s1 + $0x11a0] sm:$0xff]  ;;  %590 = vmatpush.msra.mxu0 %v194_v0  ;;  %650 = vmatpush.msra.mxu3 %v195_v5  ;;  %v183_v9 = vld [vmem:[%s3192_s1 + $0x548] sm:$0xff]  ;;  %v388_v5 = vld [vmem:[%s3192_s1 + $0xbb0] sm:$0xff] }
   0x3   :  { %v182_v2 = vld [vmem:[%s3192_s1 + $0x540] sm:$0xff]  ;;  %630 = vmatpush.msra.mxu2 %v578_v1  ;;  %v171_v13 = vld [vmem:[%s3192_s1 + $0x4e8] sm:$0xff] }
   0x4   :  { %v386_v3 = vld [vmem:[%s3192_s1 + $0xba0] sm:$0xff]  ;;  %591 = vmatpush.msra.mxu0 %v182_v2  ;;  %651 = vmatpush.msra.mxu3 %v183_v9  ;;  %v159_v15 = vld [vmem:[%s3192_s1 + $0x488] sm:$0xff]  ;;  %v376_v9 = vld [vmem:[%s3192_s1 + $0xb50] sm:$0xff] }
   0x5   :  { %v566_v4 = vld [vmem:[%s3192_s1 + $0x1140] sm:$0xff]  ;;  %610 = vmatpush.msra.mxu1 %v386_v3  ;;  %v147_v19 = vld [vmem:[%s3192_s1 + $0x428] sm:$0xff] }
   0x6   :  { %v170_v6 = vld [vmem:[%s3192_s1 + $0x4e0] sm:$0xff]  ;;  %631 = vmatpush.msra.mxu2 %v566_v4  ;;  %652 = vmatpush.msra.mxu3 %v171_v13  ;;  %v135_v23 = vld [vmem:[%s3192_s1 + $0x3c8] sm:$0xff]  ;;  %v184_v4 = vld [vmem:[%s3192_s1 + $0x550] sm:$0xff] }
   0x7   :  { %v374_v7 = vld [vmem:[%s3192_s1 + $0xb40] sm:$0xff]  ;;  %592 = vmatpush.msra.mxu0 %v170_v6  ;;  %v123_v27 = vld [vmem:[%s3192_s1 + $0x368] sm:$0xff]  ;;  %v364_v13 = vld [vmem:[%s3192_s1 + $0xaf0] sm:$0xff] }
   0x8   :  { %v554_v8 = vld [vmem:[%s3192_s1 + $0x10e0] sm:$0xff]  ;;  %611 = vmatpush.msra.mxu1 %v374_v7  ;;  %653 = vmatpush.msra.mxu3 %v159_v15  ;;  %v111_v31 = vld [vmem:[%s3192_s1 + $0x308] sm:$0xff] }
   0x9   :  { %v362_v10 = vld [vmem:[%s3192_s1 + $0xae0] sm:$0xff]  ;;  %632 = vmatpush.msra.mxu2 %v554_v8  ;;  %v99_v35 = vld [vmem:[%s3192_s1 + $0x2a8] sm:$0xff]  ;;  %v172_v8 = vld [vmem:[%s3192_s1 + $0x4f0] sm:$0xff] }
   0xa   :  { %v158_v11 = vld [vmem:[%s3192_s1 + $0x480] sm:$0xff]  ;;  %612 = vmatpush.msra.mxu1 %v362_v10  ;;  %654 = vmatpush.msra.mxu3 %v147_v19  ;;  %v87_v39 = vld [vmem:[%s3192_s1 + $0x248] sm:$0xff] }
   0xb   :  { %v542_v12 = vld [vmem:[%s3192_s1 + $0x1080] sm:$0xff]  ;;  %593 = vmatpush.msra.mxu0 %v158_v11  ;;  %v75_v43 = vld [vmem:[%s3192_s1 + $0x1e8] sm:$0xff] }
   0xc   :  { %v350_v14 = vld [vmem:[%s3192_s1 + $0xa80] sm:$0xff]  ;;  %633 = vmatpush.msra.mxu2 %v542_v12  ;;  %655 = vmatpush.msra.mxu3 %v135_v23  ;;  %v63_v47 = vld [vmem:[%s3192_s1 + $0x188] sm:$0xff]  ;;  %v160_v12 = vld [vmem:[%s3192_s1 + $0x490] sm:$0xff] }
   0xd   :  { %v146_v16 = vld [vmem:[%s3192_s1 + $0x420] sm:$0xff]  ;;  %613 = vmatpush.msra.mxu1 %v350_v14  ;;  %v51_v51 = vld [vmem:[%s3192_s1 + $0x128] sm:$0xff] }
   0xe   :  { %v530_v17 = vld [vmem:[%s3192_s1 + $0x1020] sm:$0xff]  ;;  %594 = vmatpush.msra.mxu0 %v146_v16  ;;  %656 = vmatpush.msra.mxu3 %v123_v27  ;;  %v39_v55 = vld [vmem:[%s3192_s1 + $0xc8] sm:$0xff]  ;;  %v148_v16 = vld [vmem:[%s3192_s1 + $0x430] sm:$0xff] }
   0xf   :  { %v338_v18 = vld [vmem:[%s3192_s1 + $0xa20] sm:$0xff]  ;;  %634 = vmatpush.msra.mxu2 %v530_v17  ;;  %v27_v59 = vld [vmem:[%s3192_s1 + $0x68] sm:$0xff]  ;;  %v352_v17 = vld [vmem:[%s3192_s1 + $0xa90] sm:$0xff] }
  0x10   :  { %v134_v20 = vld [vmem:[%s3192_s1 + $0x3c0] sm:$0xff]  ;;  %614 = vmatpush.msra.mxu1 %v338_v18  ;;  %657 = vmatpush.msra.mxu3 %v111_v31  ;;  %v387_v62 = vld [vmem:[%s3192_s1 + $0xba8] sm:$0xff] }
  0x11   :  { %v518_v21 = vld [vmem:[%s3192_s1 + $0xfc0] sm:$0xff]  ;;  %595 = vmatpush.msra.mxu0 %v134_v20  ;;  %v15_v1 = vld [vmem:[%s3192_s1 + $0x8] sm:$0xff]  ;;  %v136_v20 = vld [vmem:[%s3192_s1 + $0x3d0] sm:$0xff] }
  0x12   :  { %v326_v22 = vld [vmem:[%s3192_s1 + $0x9c0] sm:$0xff]  ;;  %635 = vmatpush.msra.mxu2 %v518_v21  ;;  %658 = vmatpush.msra.mxu3 %v99_v35  ;;  %v375_v2 = vld [vmem:[%s3192_s1 + $0xb48] sm:$0xff]  ;;  %v340_v21 = vld [vmem:[%s3192_s1 + $0xa30] sm:$0xff] }
  0x13   :  { %v122_v24 = vld [vmem:[%s3192_s1 + $0x360] sm:$0xff]  ;;  %615 = vmatpush.msra.mxu1 %v326_v22  ;;  %v579_v3 = vld [vmem:[%s3192_s1 + $0x11a8] sm:$0xff] }
  0x14   :  { %v506_v25 = vld [vmem:[%s3192_s1 + $0xf60] sm:$0xff]  ;;  %596 = vmatpush.msra.mxu0 %v122_v24  ;;  %659 = vmatpush.msra.mxu3 %v87_v39  ;;  %v363_v6 = vld [vmem:[%s3192_s1 + $0xae8] sm:$0xff]  ;;  %v124_v24 = vld [vmem:[%s3192_s1 + $0x370] sm:$0xff] }
  0x15   :  { %v314_v26 = vld [vmem:[%s3192_s1 + $0x960] sm:$0xff]  ;;  %636 = vmatpush.msra.mxu2 %v506_v25  ;;  %v567_v7 = vld [vmem:[%s3192_s1 + $0x1148] sm:$0xff]  ;;  %v328_v25 = vld [vmem:[%s3192_s1 + $0x9d0] sm:$0xff] }
  0x16   :  { %v110_v28 = vld [vmem:[%s3192_s1 + $0x300] sm:$0xff]  ;;  %616 = vmatpush.msra.mxu1 %v314_v26  ;;  %660 = vmatpush.msra.mxu3 %v75_v43  ;;  %v351_v10 = vld [vmem:[%s3192_s1 + $0xa88] sm:$0xff] }
  0x17   :  { %v494_v29 = vld [vmem:[%s3192_s1 + $0xf00] sm:$0xff]  ;;  %597 = vmatpush.msra.mxu0 %v110_v28  ;;  %v555_v11 = vld [vmem:[%s3192_s1 + $0x10e8] sm:$0xff]  ;;  %v112_v28 = vld [vmem:[%s3192_s1 + $0x310] sm:$0xff] }
  0x18   :  { %v302_v30 = vld [vmem:[%s3192_s1 + $0x900] sm:$0xff]  ;;  %637 = vmatpush.msra.mxu2 %v494_v29  ;;  %661 = vmatpush.msra.mxu3 %v63_v47  ;;  %v339_v14 = vld [vmem:[%s3192_s1 + $0xa28] sm:$0xff]  ;;  %v316_v29 = vld [vmem:[%s3192_s1 + $0x970] sm:$0xff] }
  0x19   :  { %v98_v32 = vld [vmem:[%s3192_s1 + $0x2a0] sm:$0xff]  ;;  %617 = vmatpush.msra.mxu1 %v302_v30  ;;  %v543_v15 = vld [vmem:[%s3192_s1 + $0x1088] sm:$0xff] }
  0x1a   :  { %v482_v33 = vld [vmem:[%s3192_s1 + $0xea0] sm:$0xff]  ;;  %598 = vmatpush.msra.mxu0 %v98_v32  ;;  %662 = vmatpush.msra.mxu3 %v51_v51  ;;  %v327_v18 = vld [vmem:[%s3192_s1 + $0x9c8] sm:$0xff]  ;;  %v100_v32 = vld [vmem:[%s3192_s1 + $0x2b0] sm:$0xff] }
  0x1b   :  { %v290_v34 = vld [vmem:[%s3192_s1 + $0x8a0] sm:$0xff]  ;;  %638 = vmatpush.msra.mxu2 %v482_v33  ;;  %v531_v19 = vld [vmem:[%s3192_s1 + $0x1028] sm:$0xff]  ;;  %v304_v33 = vld [vmem:[%s3192_s1 + $0x910] sm:$0xff] }
  0x1c   :  { %v86_v36 = vld [vmem:[%s3192_s1 + $0x240] sm:$0xff]  ;;  %618 = vmatpush.msra.mxu1 %v290_v34  ;;  %663 = vmatpush.msra.mxu3 %v39_v55  ;;  %v315_v22 = vld [vmem:[%s3192_s1 + $0x968] sm:$0xff] }
  0x1d   :  { %v470_v37 = vld [vmem:[%s3192_s1 + $0xe40] sm:$0xff]  ;;  %599 = vmatpush.msra.mxu0 %v86_v36  ;;  %v519_v23 = vld [vmem:[%s3192_s1 + $0xfc8] sm:$0xff]  ;;  %v88_v36 = vld [vmem:[%s3192_s1 + $0x250] sm:$0xff] }
  0x1e   :  { %v278_v38 = vld [vmem:[%s3192_s1 + $0x840] sm:$0xff]  ;;  %639 = vmatpush.msra.mxu2 %v470_v37  ;;  %664 = vmatpush.msra.mxu3 %v27_v59  ;;  %v303_v26 = vld [vmem:[%s3192_s1 + $0x908] sm:$0xff]  ;;  %v292_v37 = vld [vmem:[%s3192_s1 + $0x8b0] sm:$0xff] }
  0x1f   :  { %v74_v40 = vld [vmem:[%s3192_s1 + $0x1e0] sm:$0xff]  ;;  %619 = vmatpush.msra.mxu1 %v278_v38  ;;  %v507_v27 = vld [vmem:[%s3192_s1 + $0xf68] sm:$0xff] }
  0x20   :  { %v458_v41 = vld [vmem:[%s3192_s1 + $0xde0] sm:$0xff]  ;;  %600 = vmatpush.msra.mxu0 %v74_v40  ;;  %665 = vmatpush.msra.mxu3 %v15_v1  ;;  %v291_v30 = vld [vmem:[%s3192_s1 + $0x8a8] sm:$0xff]  ;;  %v76_v40 = vld [vmem:[%s3192_s1 + $0x1f0] sm:$0xff] }
  0x21   :  { %v266_v42 = vld [vmem:[%s3192_s1 + $0x7e0] sm:$0xff]  ;;  %640 = vmatpush.msra.mxu2 %v458_v41  ;;  %v495_v31 = vld [vmem:[%s3192_s1 + $0xf08] sm:$0xff]  ;;  %v280_v41 = vld [vmem:[%s3192_s1 + $0x850] sm:$0xff] }
  0x22   :  { %v62_v44 = vld [vmem:[%s3192_s1 + $0x180] sm:$0xff]  ;;  %620 = vmatpush.msra.mxu1 %v266_v42  ;;  %730 = vmatpush.msrb.mxu3 %v388_v5  ;;  %v279_v34 = vld [vmem:[%s3192_s1 + $0x848] sm:$0xff]  ;;  %v580_v1 = vld [vmem:[%s3192_s1 + $0x11b0] sm:$0xff] }
  0x23   :  { %v446_v45 = vld [vmem:[%s3192_s1 + $0xd80] sm:$0xff]  ;;  %601 = vmatpush.msra.mxu0 %v62_v44  ;;  %v483_v35 = vld [vmem:[%s3192_s1 + $0xea8] sm:$0xff]  ;;  %v64_v44 = vld [vmem:[%s3192_s1 + $0x190] sm:$0xff] }
  0x24   :  { %v254_v46 = vld [vmem:[%s3192_s1 + $0x780] sm:$0xff]  ;;  %641 = vmatpush.msra.mxu2 %v446_v45  ;;  %731 = vmatpush.msrb.mxu3 %v376_v9  ;;  %v267_v38 = vld [vmem:[%s3192_s1 + $0x7e8] sm:$0xff]  ;;  %v268_v45 = vld [vmem:[%s3192_s1 + $0x7f0] sm:$0xff] }
  0x25   :  { %v50_v48 = vld [vmem:[%s3192_s1 + $0x120] sm:$0xff]  ;;  %621 = vmatpush.msra.mxu1 %v254_v46  ;;  %v471_v39 = vld [vmem:[%s3192_s1 + $0xe48] sm:$0xff]  ;;  %v568_v5 = vld [vmem:[%s3192_s1 + $0x1150] sm:$0xff] }
  0x26   :  { %v434_v49 = vld [vmem:[%s3192_s1 + $0xd20] sm:$0xff]  ;;  %602 = vmatpush.msra.mxu0 %v50_v48  ;;  %732 = vmatpush.msrb.mxu3 %v364_v13  ;;  %v255_v42 = vld [vmem:[%s3192_s1 + $0x788] sm:$0xff]  ;;  %v52_v48 = vld [vmem:[%s3192_s1 + $0x130] sm:$0xff] }
  0x27   :  { %v242_v50 = vld [vmem:[%s3192_s1 + $0x720] sm:$0xff]  ;;  %642 = vmatpush.msra.mxu2 %v434_v49  ;;  %v459_v43 = vld [vmem:[%s3192_s1 + $0xde8] sm:$0xff]  ;;  %v256_v49 = vld [vmem:[%s3192_s1 + $0x790] sm:$0xff] }
  0x28   :  { %v38_v52 = vld [vmem:[%s3192_s1 + $0xc0] sm:$0xff]  ;;  %622 = vmatpush.msra.mxu1 %v242_v50  ;;  %733 = vmatpush.msrb.mxu3 %v352_v17  ;;  %v243_v46 = vld [vmem:[%s3192_s1 + $0x728] sm:$0xff]  ;;  %v185_v9 = vld [vmem:[%s3192_s1 + $0x558] sm:$0xff] }
  0x29   :  { %v422_v53 = vld [vmem:[%s3192_s1 + $0xcc0] sm:$0xff]  ;;  %603 = vmatpush.msra.mxu0 %v38_v52  ;;  %v447_v47 = vld [vmem:[%s3192_s1 + $0xd88] sm:$0xff]  ;;  %v40_v52 = vld [vmem:[%s3192_s1 + $0xd0] sm:$0xff] }
  0x2a   :  { %v230_v54 = vld [vmem:[%s3192_s1 + $0x6c0] sm:$0xff]  ;;  %643 = vmatpush.msra.mxu2 %v422_v53  ;;  %734 = vmatpush.msrb.mxu3 %v340_v21  ;;  %v231_v50 = vld [vmem:[%s3192_s1 + $0x6c8] sm:$0xff]  ;;  %v244_v53 = vld [vmem:[%s3192_s1 + $0x730] sm:$0xff] }
  0x2b   :  { %v26_v56 = vld [vmem:[%s3192_s1 + $0x60] sm:$0xff]  ;;  %623 = vmatpush.msra.mxu1 %v230_v54  ;;  %v435_v51 = vld [vmem:[%s3192_s1 + $0xd28] sm:$0xff]  ;;  %v544_v13 = vld [vmem:[%s3192_s1 + $0x1090] sm:$0xff] }
  0x2c   :  { %v410_v57 = vld [vmem:[%s3192_s1 + $0xc60] sm:$0xff]  ;;  %604 = vmatpush.msra.mxu0 %v26_v56  ;;  %735 = vmatpush.msrb.mxu3 %v328_v25  ;;  %v423_v55 = vld [vmem:[%s3192_s1 + $0xcc8] sm:$0xff]  ;;  %v532_v17 = vld [vmem:[%s3192_s1 + $0x1030] sm:$0xff] }
  0x2d   :  { %v218_v58 = vld [vmem:[%s3192_s1 + $0x660] sm:$0xff]  ;;  %644 = vmatpush.msra.mxu2 %v410_v57  ;;  %v219_v56 = vld [vmem:[%s3192_s1 + $0x668] sm:$0xff]  ;;  %v28_v57 = vld [vmem:[%s3192_s1 + $0x70] sm:$0xff] }
  0x2e   :  { %v14_v60 = vld [vmem:[%s3192_s1] sm:$0xff]  ;;  %624 = vmatpush.msra.mxu1 %v218_v58  ;;  %736 = vmatpush.msrb.mxu3 %v316_v29  ;;  %v232_v58 = vld [vmem:[%s3192_s1 + $0x6d0] sm:$0xff]  ;;  %v1743_v59 = vld [vmem:[%s3193_s0 + $0x8] sm:$0xff] }
  0x2f   :  { %v398_v61 = vld [vmem:[%s3192_s1 + $0xc00] sm:$0xff]  ;;  %605 = vmatpush.msra.mxu0 %v14_v60  ;;  %v207_v60 = vld [vmem:[%s3192_s1 + $0x608] sm:$0xff]  ;;  %v520_v21 = vld [vmem:[%s3192_s1 + $0xfd0] sm:$0xff] }
  0x30   :  { %v206_v0 = vld [vmem:[%s3192_s1 + $0x600] sm:$0xff]  ;;  %645 = vmatpush.msra.mxu2 %v398_v61  ;;  %737 = vmatpush.msrb.mxu3 %v304_v33  ;;  %v411_v61 = vld [vmem:[%s3192_s1 + $0xc68] sm:$0xff]  ;;  %v508_v25 = vld [vmem:[%s3192_s1 + $0xf70] sm:$0xff] }
  0x31   :  { %670 = vmatpush.msrb.mxu0 %v387_v62  ;;  %625 = vmatpush.msra.mxu1 %v206_v0  ;;  %v1726_v54 = vld [vmem:[%s3193_s0] sm:$0xff]  ;;  %v16_v62 = vld [vmem:[%s3192_s1 + $0x10] sm:$0xff] }
  0x32   :  { %710 = vmatpush.msrb.mxu2 %v196_v63  ;;  %738 = vmatpush.msrb.mxu3 %v292_v37  ;;  %v220_v63 = vld [vmem:[%s3192_s1 + $0x670] sm:$0xff] }
  0x33   :  { %671 = vmatpush.msrb.mxu0 %v375_v2  ;;  %690 = vmatpush.msrb.mxu1 %v579_v3  ;;  %v1762_v0 = vld [vmem:[%s3193_s0 + $0x10] sm:$0xff]  ;;  %v389_v2 = vld [vmem:[%s3192_s1 + $0xbb8] sm:$0xff]  ;;  %v399_v3 = vld [vmem:[%s3192_s1 + $0xc08] sm:$0xff] }
  0x34   :  { %711 = vmatpush.msrb.mxu2 %v184_v4  ;;  %739 = vmatpush.msrb.mxu3 %v280_v41  ;;  %v208_v4 = vld [vmem:[%s3192_s1 + $0x610] sm:$0xff] }
  0x35   :  { %672 = vmatpush.msrb.mxu0 %v363_v6  ;;  %691 = vmatpush.msrb.mxu1 %v567_v7  ;;  %v197_v6 = vld [vmem:[%s3192_s1 + $0x5b8] sm:$0xff]  ;;  %v496_v29 = vld [vmem:[%s3192_s1 + $0xf10] sm:$0xff] }
  0x36   :  { %712 = vmatpush.msrb.mxu2 %v172_v8  ;;  %740 = vmatpush.msrb.mxu3 %v268_v45  ;;  %v377_v7 = vld [vmem:[%s3192_s1 + $0xb58] sm:$0xff]  ;;  %v484_v33 = vld [vmem:[%s3192_s1 + $0xeb0] sm:$0xff] }
  0x37   :  { %673 = vmatpush.msrb.mxu0 %v351_v10  ;;  %692 = vmatpush.msrb.mxu1 %v555_v11  ;;  %v581_v8 = vld [vmem:[%s3192_s1 + $0x11b8] sm:$0xff]  ;;  %v556_v10 = vld [vmem:[%s3192_s1 + $0x10f0] sm:$0xff] }
  0x38   :  { %713 = vmatpush.msrb.mxu2 %v160_v12  ;;  %741 = vmatpush.msrb.mxu3 %v256_v49  ;;  %v365_v11 = vld [vmem:[%s3192_s1 + $0xaf8] sm:$0xff]  ;;  %v472_v37 = vld [vmem:[%s3192_s1 + $0xe50] sm:$0xff] }
  0x39   :  { %674 = vmatpush.msrb.mxu0 %v339_v14  ;;  %693 = vmatpush.msrb.mxu1 %v543_v15  ;;  %v569_v12 = vld [vmem:[%s3192_s1 + $0x1158] sm:$0xff]  ;;  %v460_v41 = vld [vmem:[%s3192_s1 + $0xdf0] sm:$0xff] }
  0x3a   :  { %714 = vmatpush.msrb.mxu2 %v148_v16  ;;  %742 = vmatpush.msrb.mxu3 %v244_v53  ;;  %v173_v14 = vld [vmem:[%s3192_s1 + $0x4f8] sm:$0xff]  ;;  %v448_v45 = vld [vmem:[%s3192_s1 + $0xd90] sm:$0xff] }
  0x3b   :  { %675 = vmatpush.msrb.mxu0 %v327_v18  ;;  %694 = vmatpush.msrb.mxu1 %v531_v19  ;;  %v353_v15 = vld [vmem:[%s3192_s1 + $0xa98] sm:$0xff]  ;;  %v436_v49 = vld [vmem:[%s3192_s1 + $0xd30] sm:$0xff] }
  0x3c   :  { %715 = vmatpush.msrb.mxu2 %v136_v20  ;;  %606 = vmatmul.f32.vlgmr.msra.gmra.mxu0 %v1726_v54  ;;  %v557_v16 = vld [vmem:[%s3192_s1 + $0x10f8] sm:$0xff]  ;;  %v424_v53 = vld [vmem:[%s3192_s1 + $0xcd0] sm:$0xff] }
  0x3d   :  { %676 = vmatpush.msrb.mxu0 %v315_v22  ;;  %695 = vmatpush.msrb.mxu1 %v519_v23  ;;  %v161_v18 = vld [vmem:[%s3192_s1 + $0x498] sm:$0xff] }
  0x3e   :  { %716 = vmatpush.msrb.mxu2 %v124_v24  ;;  %743 = vmatpush.msrb.mxu3 %v232_v58  ;;  %v341_v19 = vld [vmem:[%s3192_s1 + $0xa38] sm:$0xff]  ;;  %v412_v58 = vld [vmem:[%s3192_s1 + $0xc70] sm:$0xff] }
  0x3f   :  { %677 = vmatpush.msrb.mxu0 %v303_v26  ;;  %696 = vmatpush.msrb.mxu1 %v507_v27  ;;  %v545_v20 = vld [vmem:[%s3192_s1 + $0x1098] sm:$0xff] }
  0x40   :  { %717 = vmatpush.msrb.mxu2 %v112_v28  ;;  %626 = vmatmul.f32.vlgmr.msra.gmra.mxu1 %v1743_v59  ;;  %v149_v22 = vld [vmem:[%s3192_s1 + $0x438] sm:$0xff] }
  0x41   :  { %678 = vmatpush.msrb.mxu0 %v291_v30  ;;  %697 = vmatpush.msrb.mxu1 %v495_v31  ;;  %v329_v23 = vld [vmem:[%s3192_s1 + $0x9d8] sm:$0xff] }
  0x42   :  { %718 = vmatpush.msrb.mxu2 %v100_v32  ;;  %666 = vmatmul.f32.vlgmr.msra.gmra.mxu3 %v1726_v54  ;;  %v533_v24 = vld [vmem:[%s3192_s1 + $0x1038] sm:$0xff] }
  0x43   :  { %679 = vmatpush.msrb.mxu0 %v279_v34  ;;  %698 = vmatpush.msrb.mxu1 %v483_v35  ;;  %v137_v26 = vld [vmem:[%s3192_s1 + $0x3d8] sm:$0xff] }
  0x44   :  { %719 = vmatpush.msrb.mxu2 %v88_v36  ;;  %744 = vmatpush.msrb.mxu3 %v220_v63  ;;  %v317_v27 = vld [vmem:[%s3192_s1 + $0x978] sm:$0xff]  ;;  %v400_v63 = vld [vmem:[%s3192_s1 + $0xc10] sm:$0xff] }
  0x45   :  { %680 = vmatpush.msrb.mxu0 %v267_v38  ;;  %699 = vmatpush.msrb.mxu1 %v471_v39  ;;  %v521_v28 = vld [vmem:[%s3192_s1 + $0xfd8] sm:$0xff] }
  0x46   :  { %720 = vmatpush.msrb.mxu2 %v76_v40  ;;  %745 = vmatpush.msrb.mxu3 %v208_v4  ;;  %v125_v30 = vld [vmem:[%s3192_s1 + $0x378] sm:$0xff]  ;;  %v582_v4 = vld [vmem:[%s3192_s1 + $0x11c0] sm:$0xff] }
  0x47   :  { %681 = vmatpush.msrb.mxu0 %v255_v42  ;;  %700 = vmatpush.msrb.mxu1 %v459_v43  ;;  %v305_v31 = vld [vmem:[%s3192_s1 + $0x918] sm:$0xff] }
  0x48   :  { %721 = vmatpush.msrb.mxu2 %v64_v44  ;;  %810 = vmatpush.msra.mxu3 %v581_v8  ;;  %v509_v32 = vld [vmem:[%s3192_s1 + $0xf78] sm:$0xff]  ;;  %v390_v8 = vld [vmem:[%s3192_s1 + $0xbc0] sm:$0xff] }
  0x49   :  { %682 = vmatpush.msrb.mxu0 %v243_v46  ;;  %701 = vmatpush.msrb.mxu1 %v447_v47  ;;  %v113_v34 = vld [vmem:[%s3192_s1 + $0x318] sm:$0xff] }
  0x4a   :  { %722 = vmatpush.msrb.mxu2 %v52_v48  ;;  %811 = vmatpush.msra.mxu3 %v569_v12  ;;  %v293_v35 = vld [vmem:[%s3192_s1 + $0x8b8] sm:$0xff]  ;;  %v378_v12 = vld [vmem:[%s3192_s1 + $0xb60] sm:$0xff] }
  0x4b   :  { %683 = vmatpush.msrb.mxu0 %v231_v50  ;;  %702 = vmatpush.msrb.mxu1 %v435_v51  ;;  %v497_v36 = vld [vmem:[%s3192_s1 + $0xf18] sm:$0xff] }
  0x4c   :  { %723 = vmatpush.msrb.mxu2 %v40_v52  ;;  %812 = vmatpush.msra.mxu3 %v557_v16  ;;  %v101_v38 = vld [vmem:[%s3192_s1 + $0x2b8] sm:$0xff]  ;;  %v366_v16 = vld [vmem:[%s3192_s1 + $0xb00] sm:$0xff] }
  0x4d   :  { %703 = vmatpush.msrb.mxu1 %v423_v55  ;;  %684 = vmatpush.msrb.mxu0 %v219_v56  ;;  %v281_v39 = vld [vmem:[%s3192_s1 + $0x858] sm:$0xff] }
  0x4e   :  { %724 = vmatpush.msrb.mxu2 %v28_v57  ;;  %813 = vmatpush.msra.mxu3 %v545_v20  ;;  %v485_v40 = vld [vmem:[%s3192_s1 + $0xeb8] sm:$0xff]  ;;  %v354_v20 = vld [vmem:[%s3192_s1 + $0xaa0] sm:$0xff] }
  0x4f   :  { %685 = vmatpush.msrb.mxu0 %v207_v60  ;;  %704 = vmatpush.msrb.mxu1 %v411_v61  ;;  %v89_v42 = vld [vmem:[%s3192_s1 + $0x258] sm:$0xff] }
  0x50   :  { %725 = vmatpush.msrb.mxu2 %v16_v62  ;;  %686 = vmatmul.f32.vlgmr.msrb.gmra.mxu0 %v1743_v59  ;;  %v269_v43 = vld [vmem:[%s3192_s1 + $0x7f8] sm:$0xff] }
  0x51   :  { %646 = vmatmul.f32.vlgmr.msra.gmra.mxu2 %v1762_v0  ;;  %750 = vmatpush.msra.mxu0 %v580_v1  ;;  %v473_v44 = vld [vmem:[%s3192_s1 + $0xe58] sm:$0xff] }
  0x52   :  { %790 = vmatpush.msra.mxu2 %v389_v2  ;;  %705 = vmatpush.msrb.mxu1 %v399_v3  ;;  %v77_v46 = vld [vmem:[%s3192_s1 + $0x1f8] sm:$0xff] }
  0x53   :  { %751 = vmatpush.msra.mxu0 %v568_v5  ;;  %706 = vmatmul.f32.vlgmr.msrb.gmra.mxu1 %v1762_v0  ;;  %v257_v47 = vld [vmem:[%s3192_s1 + $0x798] sm:$0xff]  ;;  %v198_v5 = vld [vmem:[%s3192_s1 + $0x5c0] sm:$0xff] }
  0x54   :  { %770 = vmatpush.msra.mxu1 %v197_v6  ;;  %791 = vmatpush.msra.mxu2 %v377_v7  ;;  %v461_v48 = vld [vmem:[%s3192_s1 + $0xdf8] sm:$0xff] }
  0x55   :  { %752 = vmatpush.msra.mxu0 %v556_v10  ;;  %814 = vmatpush.msra.mxu3 %v533_v24  ;;  %v65_v50 = vld [vmem:[%s3192_s1 + $0x198] sm:$0xff]  ;;  %v570_v10 = vld [vmem:[%s3192_s1 + $0x1160] sm:$0xff] }
  0x56   :  { %771 = vmatpush.msra.mxu1 %v185_v9  ;;  %792 = vmatpush.msra.mxu2 %v365_v11  ;;  %v245_v51 = vld [vmem:[%s3192_s1 + $0x738] sm:$0xff]  ;;  %v186_v9 = vld [vmem:[%s3192_s1 + $0x560] sm:$0xff]  ;;  %v199_v11 = vld [vmem:[%s3192_s1 + $0x5c8] sm:$0xff] }
  0x57   :  { %753 = vmatpush.msra.mxu0 %v544_v13  ;;  %815 = vmatpush.msra.mxu3 %v521_v28  ;;  %v449_v52 = vld [vmem:[%s3192_s1 + $0xd98] sm:$0xff]  ;;  %v174_v13 = vld [vmem:[%s3192_s1 + $0x500] sm:$0xff] }
  0x58   :  { %772 = vmatpush.msra.mxu1 %v173_v14  ;;  %793 = vmatpush.msra.mxu2 %v353_v15  ;;  %v53_v55 = vld [vmem:[%s3192_s1 + $0x138] sm:$0xff]  ;;  %v558_v14 = vld [vmem:[%s3192_s1 + $0x1100] sm:$0xff]  ;;  %v187_v15 = vld [vmem:[%s3192_s1 + $0x568] sm:$0xff] }
  0x59   :  { %754 = vmatpush.msra.mxu0 %v532_v17  ;;  %816 = vmatpush.msra.mxu3 %v509_v32  ;;  %v233_v56 = vld [vmem:[%s3192_s1 + $0x6d8] sm:$0xff]  ;;  %v162_v17 = vld [vmem:[%s3192_s1 + $0x4a0] sm:$0xff] }
  0x5a   :  { %773 = vmatpush.msra.mxu1 %v161_v18  ;;  %794 = vmatpush.msra.mxu2 %v341_v19  ;;  %v437_v57 = vld [vmem:[%s3192_s1 + $0xd38] sm:$0xff]  ;;  %v546_v18 = vld [vmem:[%s3192_s1 + $0x10a0] sm:$0xff]  ;;  %v175_v19 = vld [vmem:[%s3192_s1 + $0x508] sm:$0xff] }
  0x5b   :  { %755 = vmatpush.msra.mxu0 %v520_v21  ;;  %817 = vmatpush.msra.mxu3 %v497_v36  ;;  %v41_v60 = vld [vmem:[%s3192_s1 + $0xd8] sm:$0xff]  ;;  %v150_v21 = vld [vmem:[%s3192_s1 + $0x440] sm:$0xff] }
  0x5c   :  { %774 = vmatpush.msra.mxu1 %v149_v22  ;;  %795 = vmatpush.msra.mxu2 %v329_v23  ;;  %v221_v61 = vld [vmem:[%s3192_s1 + $0x678] sm:$0xff]  ;;  %v534_v22 = vld [vmem:[%s3192_s1 + $0x1040] sm:$0xff]  ;;  %v163_v23 = vld [vmem:[%s3192_s1 + $0x4a8] sm:$0xff] }
  0x5d   :  { %756 = vmatpush.msra.mxu0 %v508_v25  ;;  %818 = vmatpush.msra.mxu3 %v485_v40  ;;  %v425_v62 = vld [vmem:[%s3192_s1 + $0xcd8] sm:$0xff]  ;;  %v342_v24 = vld [vmem:[%s3192_s1 + $0xa40] sm:$0xff] }
  0x5e   :  { %775 = vmatpush.msra.mxu1 %v137_v26  ;;  %796 = vmatpush.msra.mxu2 %v317_v27  ;;  %v29_v1 = vld [vmem:[%s3192_s1 + $0x78] sm:$0xff]  ;;  %v138_v25 = vld [vmem:[%s3192_s1 + $0x3e0] sm:$0xff]  ;;  %v151_v27 = vld [vmem:[%s3192_s1 + $0x448] sm:$0xff] }
  0x5f   :  { %757 = vmatpush.msra.mxu0 %v496_v29  ;;  %819 = vmatpush.msra.mxu3 %v473_v44  ;;  %v209_v2 = vld [vmem:[%s3192_s1 + $0x618] sm:$0xff]  ;;  %v522_v26 = vld [vmem:[%s3192_s1 + $0xfe0] sm:$0xff] }
  0x60   :  { %776 = vmatpush.msra.mxu1 %v125_v30  ;;  %797 = vmatpush.msra.mxu2 %v305_v31  ;;  %v413_v3 = vld [vmem:[%s3192_s1 + $0xc78] sm:$0xff]  ;;  %v330_v28 = vld [vmem:[%s3192_s1 + $0x9e0] sm:$0xff]  ;;  %v139_v31 = vld [vmem:[%s3192_s1 + $0x3e8] sm:$0xff] }
  0x61   :  { %758 = vmatpush.msra.mxu0 %v484_v33  ;;  %820 = vmatpush.msra.mxu3 %v461_v48  ;;  %v17_v6 = vld [vmem:[%s3192_s1 + $0x18] sm:$0xff]  ;;  %v126_v29 = vld [vmem:[%s3192_s1 + $0x380] sm:$0xff] }
  0x62   :  { %777 = vmatpush.msra.mxu1 %v113_v34  ;;  %798 = vmatpush.msra.mxu2 %v293_v35  ;;  %v401_v7 = vld [vmem:[%s3192_s1 + $0xc18] sm:$0xff]  ;;  %v510_v30 = vld [vmem:[%s3192_s1 + $0xf80] sm:$0xff]  ;;  %v127_v35 = vld [vmem:[%s3192_s1 + $0x388] sm:$0xff] }
  0x63   :  { %759 = vmatpush.msra.mxu0 %v472_v37  ;;  %726 = vmatmul.f32.vlgmr.msrb.gmra.mxu2 %v1726_v54  ;;  %v318_v32 = vld [vmem:[%s3192_s1 + $0x980] sm:$0xff] }
  0x64   :  { %778 = vmatpush.msra.mxu1 %v101_v38  ;;  %799 = vmatpush.msra.mxu2 %v281_v39  ;;  %v114_v33 = vld [vmem:[%s3192_s1 + $0x320] sm:$0xff]  ;;  %v115_v39 = vld [vmem:[%s3192_s1 + $0x328] sm:$0xff] }
  0x65   :  { %760 = vmatpush.msra.mxu0 %v460_v41  ;;  %746 = vmatmul.f32.vlgmr.msrb.gmra.mxu3 %v1743_v59  ;;  %v498_v34 = vld [vmem:[%s3192_s1 + $0xf20] sm:$0xff] }
  0x66   :  { %779 = vmatpush.msra.mxu1 %v89_v42  ;;  %800 = vmatpush.msra.mxu2 %v269_v43  ;;  %v306_v36 = vld [vmem:[%s3192_s1 + $0x920] sm:$0xff]  ;;  %v103_v43 = vld [vmem:[%s3192_s1 + $0x2c8] sm:$0xff] }
  0x67   :  { %761 = vmatpush.msra.mxu0 %v448_v45  ;;  %821 = vmatpush.msra.mxu3 %v449_v52  ;;  %v102_v37 = vld [vmem:[%s3192_s1 + $0x2c0] sm:$0xff] }
  0x68   :  { %780 = vmatpush.msra.mxu1 %v77_v46  ;;  %801 = vmatpush.msra.mxu2 %v257_v47  ;;  %v486_v38 = vld [vmem:[%s3192_s1 + $0xec0] sm:$0xff]  ;;  %v91_v47 = vld [vmem:[%s3192_s1 + $0x268] sm:$0xff] }
  0x69   :  { %762 = vmatpush.msra.mxu0 %v436_v49  ;;  %822 = vmatpush.msra.mxu3 %v437_v57  ;;  %v294_v40 = vld [vmem:[%s3192_s1 + $0x8c0] sm:$0xff] }
  0x6a   :  { %781 = vmatpush.msra.mxu1 %v65_v50  ;;  %802 = vmatpush.msra.mxu2 %v245_v51  ;;  %v90_v41 = vld [vmem:[%s3192_s1 + $0x260] sm:$0xff]  ;;  %v79_v51 = vld [vmem:[%s3192_s1 + $0x208] sm:$0xff] }
  0x6b   :  { %763 = vmatpush.msra.mxu0 %v424_v53  ;;  %823 = vmatpush.msra.mxu3 %v425_v62  ;;  %v474_v42 = vld [vmem:[%s3192_s1 + $0xe60] sm:$0xff] }
  0x6c   :  { %782 = vmatpush.msra.mxu1 %v53_v55  ;;  %803 = vmatpush.msra.mxu2 %v233_v56  ;;  %v282_v44 = vld [vmem:[%s3192_s1 + $0x860] sm:$0xff]  ;;  %v67_v56 = vld [vmem:[%s3192_s1 + $0x1a8] sm:$0xff] }
  0x6d   :  { %764 = vmatpush.msra.mxu0 %v412_v58  ;;  %824 = vmatpush.msra.mxu3 %v413_v3  ;;  %v78_v45 = vld [vmem:[%s3192_s1 + $0x200] sm:$0xff] }
  0x6e   :  { %783 = vmatpush.msra.mxu1 %v41_v60  ;;  %804 = vmatpush.msra.mxu2 %v221_v61  ;;  %v462_v46 = vld [vmem:[%s3192_s1 + $0xe00] sm:$0xff]  ;;  %v55_v61 = vld [vmem:[%s3192_s1 + $0x148] sm:$0xff] }
  0x6f   :  { %765 = vmatpush.msra.mxu0 %v400_v63  ;;  %825 = vmatpush.msra.mxu3 %v401_v7  ;;  %v270_v48 = vld [vmem:[%s3192_s1 + $0x800] sm:$0xff]  ;;  %v391_v7 = vld [vmem:[%s3192_s1 + $0xbc8] sm:$0xff] }
  0x70   :  { %784 = vmatpush.msra.mxu1 %v29_v1  ;;  %805 = vmatpush.msra.mxu2 %v209_v2  ;;  %v66_v49 = vld [vmem:[%s3192_s1 + $0x1a0] sm:$0xff]  ;;  %v43_v2 = vld [vmem:[%s3192_s1 + $0xe8] sm:$0xff] }
  0x71   :  { %766 = vmatmul.f32.vlgmr.msra.gmra.mxu0 %v1762_v0  ;;  %890 = vmatpush.msrb.mxu3 %v199_v11  ;;  %v450_v50 = vld [vmem:[%s3192_s1 + $0xda0] sm:$0xff]  ;;  %v379_v11 = vld [vmem:[%s3192_s1 + $0xb68] sm:$0xff] }
  0x72   :  { %870 = vmatpush.msrb.mxu2 %v582_v4  ;;  %830 = vmatpush.msrb.mxu0 %v198_v5  ;;  %v258_v52 = vld [vmem:[%s3192_s1 + $0x7a0] sm:$0xff] }
  0x73   :  { %785 = vmatpush.msra.mxu1 %v17_v6  ;;  %891 = vmatpush.msrb.mxu3 %v187_v15  ;;  %v54_v53 = vld [vmem:[%s3192_s1 + $0x140] sm:$0xff]  ;;  %v31_v6 = vld [vmem:[%s3192_s1 + $0x88] sm:$0xff] }
  0x74   :  { %831 = vmatpush.msrb.mxu0 %v186_v9  ;;  %871 = vmatpush.msrb.mxu2 %v570_v10  ;;  %v438_v55 = vld [vmem:[%s3192_s1 + $0xd40] sm:$0xff]  ;;  %v19_v10 = vld [vmem:[%s3192_s1 + $0x28] sm:$0xff] }
  0x75   :  { %850 = vmatpush.msrb.mxu1 %v390_v8  ;;  %892 = vmatpush.msrb.mxu3 %v175_v19  ;;  %v42_v57 = vld [vmem:[%s3192_s1 + $0xe0] sm:$0xff]  ;;  %v200_v8 = vld [vmem:[%s3192_s1 + $0x5d0] sm:$0xff]  ;;  %v367_v15 = vld [vmem:[%s3192_s1 + $0xb08] sm:$0xff] }
  0x76   :  { %832 = vmatpush.msrb.mxu0 %v174_v13  ;;  %872 = vmatpush.msrb.mxu2 %v558_v14  ;;  %v246_v58 = vld [vmem:[%s3192_s1 + $0x740] sm:$0xff]  ;;  %v188_v13 = vld [vmem:[%s3192_s1 + $0x570] sm:$0xff]  ;;  %v355_v19 = vld [vmem:[%s3192_s1 + $0xaa8] sm:$0xff] }
  0x77   :  { %851 = vmatpush.msrb.mxu1 %v378_v12  ;;  %893 = vmatpush.msrb.mxu3 %v163_v23  ;;  %v426_v60 = vld [vmem:[%s3192_s1 + $0xce0] sm:$0xff]  ;;  %v583_v12 = vld [vmem:[%s3192_s1 + $0x11c8] sm:$0xff]  ;;  %v392_v14 = vld [vmem:[%s3192_s1 + $0xbd0] sm:$0xff] }
  0x78   :  { %833 = vmatpush.msrb.mxu0 %v162_v17  ;;  %873 = vmatpush.msrb.mxu2 %v546_v18  ;;  %v30_v62 = vld [vmem:[%s3192_s1 + $0x80] sm:$0xff]  ;;  %v176_v17 = vld [vmem:[%s3192_s1 + $0x510] sm:$0xff]  ;;  %v343_v23 = vld [vmem:[%s3192_s1 + $0xa48] sm:$0xff] }
  0x79   :  { %852 = vmatpush.msrb.mxu1 %v366_v16  ;;  %894 = vmatpush.msrb.mxu3 %v151_v27  ;;  %v234_v63 = vld [vmem:[%s3192_s1 + $0x6e0] sm:$0xff]  ;;  %v571_v16 = vld [vmem:[%s3192_s1 + $0x1168] sm:$0xff]  ;;  %v380_v18 = vld [vmem:[%s3192_s1 + $0xb70] sm:$0xff] }
  0x7a   :  { %834 = vmatpush.msrb.mxu0 %v150_v21  ;;  %874 = vmatpush.msrb.mxu2 %v534_v22  ;;  %v414_v1 = vld [vmem:[%s3192_s1 + $0xc80] sm:$0xff]  ;;  %v164_v21 = vld [vmem:[%s3192_s1 + $0x4b0] sm:$0xff]  ;;  %v331_v27 = vld [vmem:[%s3192_s1 + $0x9e8] sm:$0xff] }
  0x7b   :  { %853 = vmatpush.msrb.mxu1 %v354_v20  ;;  %895 = vmatpush.msrb.mxu3 %v139_v31  ;;  %v18_v3 = vld [vmem:[%s3192_s1 + $0x20] sm:$0xff]  ;;  %v559_v20 = vld [vmem:[%s3192_s1 + $0x1108] sm:$0xff]  ;;  %v368_v22 = vld [vmem:[%s3192_s1 + $0xb10] sm:$0xff] }
  0x7c   :  { %835 = vmatpush.msrb.mxu0 %v138_v25  ;;  %875 = vmatpush.msrb.mxu2 %v522_v26  ;;  %v222_v4 = vld [vmem:[%s3192_s1 + $0x680] sm:$0xff]  ;;  %v152_v25 = vld [vmem:[%s3192_s1 + $0x450] sm:$0xff]  ;;  %v319_v31 = vld [vmem:[%s3192_s1 + $0x988] sm:$0xff] }
  0x7d   :  { %854 = vmatpush.msrb.mxu1 %v342_v24  ;;  %896 = vmatpush.msrb.mxu3 %v127_v35  ;;  %v402_v5 = vld [vmem:[%s3192_s1 + $0xc20] sm:$0xff]  ;;  %v547_v24 = vld [vmem:[%s3192_s1 + $0x10a8] sm:$0xff]  ;;  %v356_v26 = vld [vmem:[%s3192_s1 + $0xab0] sm:$0xff] }
  0x7e   :  { %836 = vmatpush.msrb.mxu0 %v126_v29  ;;  %876 = vmatpush.msrb.mxu2 %v510_v30  ;;  %v210_v9 = vld [vmem:[%s3192_s1 + $0x620] sm:$0xff]  ;;  %v140_v29 = vld [vmem:[%s3192_s1 + $0x3f0] sm:$0xff]  ;;  %v307_v35 = vld [vmem:[%s3192_s1 + $0x928] sm:$0xff] }
  0x7f   :  { %855 = vmatpush.msrb.mxu1 %v330_v28  ;;  %897 = vmatpush.msrb.mxu3 %v115_v39  ;;  %v535_v28 = vld [vmem:[%s3192_s1 + $0x1048] sm:$0xff]  ;;  %v344_v30 = vld [vmem:[%s3192_s1 + $0xa50] sm:$0xff] }
  0x80   :  { %837 = vmatpush.msrb.mxu0 %v114_v33  ;;  %877 = vmatpush.msrb.mxu2 %v498_v34  ;;  %v128_v33 = vld [vmem:[%s3192_s1 + $0x390] sm:$0xff]  ;;  %v295_v39 = vld [vmem:[%s3192_s1 + $0x8c8] sm:$0xff] }
  0x81   :  { %856 = vmatpush.msrb.mxu1 %v318_v32  ;;  %898 = vmatpush.msrb.mxu3 %v103_v43  ;;  %v523_v32 = vld [vmem:[%s3192_s1 + $0xfe8] sm:$0xff]  ;;  %v332_v34 = vld [vmem:[%s3192_s1 + $0x9f0] sm:$0xff] }
  0x82   :  { %838 = vmatpush.msrb.mxu0 %v102_v37  ;;  %878 = vmatpush.msrb.mxu2 %v486_v38  ;;  %v116_v37 = vld [vmem:[%s3192_s1 + $0x330] sm:$0xff]  ;;  %v283_v43 = vld [vmem:[%s3192_s1 + $0x868] sm:$0xff] }
  0x83   :  { %857 = vmatpush.msrb.mxu1 %v306_v36  ;;  %899 = vmatpush.msrb.mxu3 %v91_v47  ;;  %v511_v36 = vld [vmem:[%s3192_s1 + $0xf88] sm:$0xff]  ;;  %v320_v38 = vld [vmem:[%s3192_s1 + $0x990] sm:$0xff] }
  0x84   :  { %839 = vmatpush.msrb.mxu0 %v90_v41  ;;  %879 = vmatpush.msrb.mxu2 %v474_v42  ;;  %v104_v41 = vld [vmem:[%s3192_s1 + $0x2d0] sm:$0xff]  ;;  %v271_v47 = vld [vmem:[%s3192_s1 + $0x808] sm:$0xff] }
  0x85   :  { %858 = vmatpush.msrb.mxu1 %v294_v40  ;;  %900 = vmatpush.msrb.mxu3 %v79_v51  ;;  %v499_v40 = vld [vmem:[%s3192_s1 + $0xf28] sm:$0xff]  ;;  %v308_v42 = vld [vmem:[%s3192_s1 + $0x930] sm:$0xff] }
  0x86   :  { %840 = vmatpush.msrb.mxu0 %v78_v45  ;;  %880 = vmatpush.msrb.mxu2 %v462_v46  ;;  %v92_v45 = vld [vmem:[%s3192_s1 + $0x270] sm:$0xff]  ;;  %v259_v51 = vld [vmem:[%s3192_s1 + $0x7a8] sm:$0xff] }
  0x87   :  { %859 = vmatpush.msrb.mxu1 %v282_v44  ;;  %901 = vmatpush.msrb.mxu3 %v67_v56  ;;  %v487_v44 = vld [vmem:[%s3192_s1 + $0xec8] sm:$0xff]  ;;  %v296_v46 = vld [vmem:[%s3192_s1 + $0x8d0] sm:$0xff] }
  0x88   :  { %841 = vmatpush.msrb.mxu0 %v66_v49  ;;  %881 = vmatpush.msrb.mxu2 %v450_v50  ;;  %v80_v49 = vld [vmem:[%s3192_s1 + $0x210] sm:$0xff]  ;;  %v247_v56 = vld [vmem:[%s3192_s1 + $0x748] sm:$0xff] }
  0x89   :  { %860 = vmatpush.msrb.mxu1 %v270_v48  ;;  %806 = vmatmul.f32.vlgmr.msra.gmra.mxu2 %v1743_v59  ;;  %v475_v48 = vld [vmem:[%s3192_s1 + $0xe68] sm:$0xff]  ;;  %v284_v50 = vld [vmem:[%s3192_s1 + $0x870] sm:$0xff] }
  0x8a   :  { %842 = vmatpush.msrb.mxu0 %v54_v53  ;;  %882 = vmatpush.msrb.mxu2 %v438_v55  ;;  %v68_v53 = vld [vmem:[%s3192_s1 + $0x1b0] sm:$0xff] }
  0x8b   :  { %861 = vmatpush.msrb.mxu1 %v258_v52  ;;  %902 = vmatpush.msrb.mxu3 %v55_v61  ;;  %v463_v52 = vld [vmem:[%s3192_s1 + $0xe08] sm:$0xff]  ;;  %v272_v55 = vld [vmem:[%s3192_s1 + $0x810] sm:$0xff] }
  0x8c   :  { %843 = vmatpush.msrb.mxu0 %v42_v57  ;;  %883 = vmatpush.msrb.mxu2 %v426_v60  ;;  %v451_v57 = vld [vmem:[%s3192_s1 + $0xda8] sm:$0xff]  ;;  %v260_v60 = vld [vmem:[%s3192_s1 + $0x7b0] sm:$0xff] }
  0x8d   :  { %862 = vmatpush.msrb.mxu1 %v246_v58  ;;  %903 = vmatpush.msrb.mxu3 %v43_v2  ;;  %v56_v58 = vld [vmem:[%s3192_s1 + $0x150] sm:$0xff]  ;;  %v235_v61 = vld [vmem:[%s3192_s1 + $0x6e8] sm:$0xff] }
  0x8e   :  { %844 = vmatpush.msrb.mxu0 %v30_v62  ;;  %884 = vmatpush.msrb.mxu2 %v414_v1  ;;  %v439_v62 = vld [vmem:[%s3192_s1 + $0xd48] sm:$0xff]  ;;  %v248_v1 = vld [vmem:[%s3192_s1 + $0x750] sm:$0xff] }
  0x8f   :  { %863 = vmatpush.msrb.mxu1 %v234_v63  ;;  %904 = vmatpush.msrb.mxu3 %v31_v6  ;;  %v44_v63 = vld [vmem:[%s3192_s1 + $0xf0] sm:$0xff]  ;;  %v223_v2 = vld [vmem:[%s3192_s1 + $0x688] sm:$0xff] }
  0x90   :  { %786 = vmatmul.f32.vlgmr.msra.gmra.mxu1 %v1726_v54  ;;  %845 = vmatpush.msrb.mxu0 %v18_v3  ;;  %v427_v3 = vld [vmem:[%s3192_s1 + $0xce8] sm:$0xff] }
  0x91   :  { %864 = vmatpush.msrb.mxu1 %v222_v4  ;;  %885 = vmatpush.msrb.mxu2 %v402_v5  ;;  %v32_v4 = vld [vmem:[%s3192_s1 + $0x90] sm:$0xff]  ;;  %v211_v6 = vld [vmem:[%s3192_s1 + $0x628] sm:$0xff] }
  0x92   :  { %910 = vmatpush.msra.mxu0 %v391_v7  ;;  %905 = vmatpush.msrb.mxu3 %v19_v10  ;;  %v236_v5 = vld [vmem:[%s3192_s1 + $0x6f0] sm:$0xff]  ;;  %v415_v7 = vld [vmem:[%s3192_s1 + $0xc88] sm:$0xff] }
  0x93   :  { %950 = vmatpush.msra.mxu2 %v200_v8  ;;  %865 = vmatpush.msrb.mxu1 %v210_v9  ;;  %v224_v8 = vld [vmem:[%s3192_s1 + $0x690] sm:$0xff]  ;;  %v393_v9 = vld [vmem:[%s3192_s1 + $0xbd8] sm:$0xff] }
  0x94   :  { %886 = vmatmul.f32.vlgmr.msrb.gmra.mxu2 %v1762_v0  ;;  %826 = vmatmul.f32.vlgmr.msra.gmra.mxu3 %v1762_v0  ;;  %v584_v10 = vld [vmem:[%s3192_s1 + $0x11d0] sm:$0xff] }
  0x95   :  { %911 = vmatpush.msra.mxu0 %v379_v11  ;;  %930 = vmatpush.msra.mxu1 %v583_v12  ;;  %v403_v11 = vld [vmem:[%s3192_s1 + $0xc28] sm:$0xff]  ;;  %v212_v12 = vld [vmem:[%s3192_s1 + $0x630] sm:$0xff] }
  0x96   :  { %951 = vmatpush.msra.mxu2 %v188_v13  ;;  %970 = vmatpush.msra.mxu3 %v392_v14  ;;  %v572_v13 = vld [vmem:[%s3192_s1 + $0x1170] sm:$0xff]  ;;  %v381_v14 = vld [vmem:[%s3192_s1 + $0xb78] sm:$0xff] }
  0x97   :  { %912 = vmatpush.msra.mxu0 %v367_v15  ;;  %931 = vmatpush.msra.mxu1 %v571_v16  ;;  %v585_v15 = vld [vmem:[%s3192_s1 + $0x11d8] sm:$0xff] }
  0x98   :  { %952 = vmatpush.msra.mxu2 %v176_v17  ;;  %971 = vmatpush.msra.mxu3 %v380_v18  ;;  %v201_v16 = vld [vmem:[%s3192_s1 + $0x5d8] sm:$0xff] }
  0x99   :  { %846 = vmatmul.f32.vlgmr.msrb.gmra.mxu0 %v1726_v54  ;;  %866 = vmatmul.f32.vlgmr.msrb.gmra.mxu1 %v1743_v59  ;;  %v369_v17 = vld [vmem:[%s3192_s1 + $0xb18] sm:$0xff] }
  0x9a   :  { %913 = vmatpush.msra.mxu0 %v355_v19  ;;  %932 = vmatpush.msra.mxu1 %v559_v20  ;;  %v573_v18 = vld [vmem:[%s3192_s1 + $0x1178] sm:$0xff] }
  0x9b   :  { %953 = vmatpush.msra.mxu2 %v164_v21  ;;  %972 = vmatpush.msra.mxu3 %v368_v22  ;;  %v189_v19 = vld [vmem:[%s3192_s1 + $0x578] sm:$0xff] }
  0x9c   :  { %914 = vmatpush.msra.mxu0 %v343_v23  ;;  %933 = vmatpush.msra.mxu1 %v547_v24  ;;  %v357_v20 = vld [vmem:[%s3192_s1 + $0xab8] sm:$0xff]  ;;  %v536_v23 = vld [vmem:[%s3192_s1 + $0x1050] sm:$0xff] }
  0x9d   :  { %954 = vmatpush.msra.mxu2 %v152_v25  ;;  %973 = vmatpush.msra.mxu3 %v356_v26  ;;  %v561_v21 = vld [vmem:[%s3192_s1 + $0x1118] sm:$0xff] }
  0x9e   :  { %915 = vmatpush.msra.mxu0 %v331_v27  ;;  %934 = vmatpush.msra.mxu1 %v535_v28  ;;  %v177_v22 = vld [vmem:[%s3192_s1 + $0x518] sm:$0xff]  ;;  %v524_v27 = vld [vmem:[%s3192_s1 + $0xff0] sm:$0xff] }
  0x9f   :  { %955 = vmatpush.msra.mxu2 %v140_v29  ;;  %974 = vmatpush.msra.mxu3 %v344_v30  ;;  %v345_v24 = vld [vmem:[%s3192_s1 + $0xa58] sm:$0xff] }
  0xa0   :  { %916 = vmatpush.msra.mxu0 %v319_v31  ;;  %935 = vmatpush.msra.mxu1 %v523_v32  ;;  %v549_v25 = vld [vmem:[%s3192_s1 + $0x10b8] sm:$0xff]  ;;  %v512_v31 = vld [vmem:[%s3192_s1 + $0xf90] sm:$0xff] }
  0xa1   :  { %956 = vmatpush.msra.mxu2 %v128_v33  ;;  %975 = vmatpush.msra.mxu3 %v332_v34  ;;  %v165_v26 = vld [vmem:[%s3192_s1 + $0x4b8] sm:$0xff] }
  0xa2   :  { %917 = vmatpush.msra.mxu0 %v307_v35  ;;  %936 = vmatpush.msra.mxu1 %v511_v36  ;;  %v333_v28 = vld [vmem:[%s3192_s1 + $0x9f8] sm:$0xff]  ;;  %v500_v35 = vld [vmem:[%s3192_s1 + $0xf30] sm:$0xff] }
  0xa3   :  { %957 = vmatpush.msra.mxu2 %v116_v37  ;;  %976 = vmatpush.msra.mxu3 %v320_v38  ;;  %v537_v29 = vld [vmem:[%s3192_s1 + $0x1058] sm:$0xff] }
  0xa4   :  { %918 = vmatpush.msra.mxu0 %v295_v39  ;;  %937 = vmatpush.msra.mxu1 %v499_v40  ;;  %v153_v30 = vld [vmem:[%s3192_s1 + $0x458] sm:$0xff]  ;;  %v488_v39 = vld [vmem:[%s3192_s1 + $0xed0] sm:$0xff] }
  0xa5   :  { %958 = vmatpush.msra.mxu2 %v104_v41  ;;  %977 = vmatpush.msra.mxu3 %v308_v42  ;;  %v321_v32 = vld [vmem:[%s3192_s1 + $0x998] sm:$0xff] }
  0xa6   :  { %919 = vmatpush.msra.mxu0 %v283_v43  ;;  %938 = vmatpush.msra.mxu1 %v487_v44  ;;  %v525_v33 = vld [vmem:[%s3192_s1 + $0xff8] sm:$0xff]  ;;  %v476_v43 = vld [vmem:[%s3192_s1 + $0xe70] sm:$0xff] }
  0xa7   :  { %959 = vmatpush.msra.mxu2 %v92_v45  ;;  %978 = vmatpush.msra.mxu3 %v296_v46  ;;  %v141_v34 = vld [vmem:[%s3192_s1 + $0x3f8] sm:$0xff] }
  0xa8   :  { %920 = vmatpush.msra.mxu0 %v271_v47  ;;  %939 = vmatpush.msra.mxu1 %v475_v48  ;;  %v309_v36 = vld [vmem:[%s3192_s1 + $0x938] sm:$0xff]  ;;  %v464_v47 = vld [vmem:[%s3192_s1 + $0xe10] sm:$0xff] }
  0xa9   :  { %960 = vmatpush.msra.mxu2 %v80_v49  ;;  %979 = vmatpush.msra.mxu3 %v284_v50  ;;  %v513_v37 = vld [vmem:[%s3192_s1 + $0xf98] sm:$0xff] }
  0xaa   :  { %921 = vmatpush.msra.mxu0 %v259_v51  ;;  %940 = vmatpush.msra.mxu1 %v463_v52  ;;  %v129_v38 = vld [vmem:[%s3192_s1 + $0x398] sm:$0xff]  ;;  %v452_v51 = vld [vmem:[%s3192_s1 + $0xdb0] sm:$0xff] }
  0xab   :  { %961 = vmatpush.msra.mxu2 %v68_v53  ;;  %980 = vmatpush.msra.mxu3 %v272_v55  ;;  %v297_v40 = vld [vmem:[%s3192_s1 + $0x8d8] sm:$0xff]  ;;  %v440_v55 = vld [vmem:[%s3192_s1 + $0xd50] sm:$0xff] }
  0xac   :  { %922 = vmatpush.msra.mxu0 %v247_v56  ;;  %941 = vmatpush.msra.mxu1 %v451_v57  ;;  %v501_v41 = vld [vmem:[%s3192_s1 + $0xf38] sm:$0xff] }
  0xad   :  { %962 = vmatpush.msra.mxu2 %v56_v58  ;;  %981 = vmatpush.msra.mxu3 %v260_v60  ;;  %v117_v42 = vld [vmem:[%s3192_s1 + $0x338] sm:$0xff]  ;;  %v2512_v60 = vld [vmem:[%s3193_s0] sm:$0xff] }
  0xae   :  { %923 = vmatpush.msra.mxu0 %v235_v61  ;;  %906 = vmatmul.f32.vlgmr.msrb.gmra.mxu3 %v1726_v54  ;;  %v20_v54 = vld [vmem:[%s3192_s1 + $0x30] sm:$0xff]  ;;  %v285_v44 = vld [vmem:[%s3192_s1 + $0x878] sm:$0xff] }
  0xaf   :  { %942 = vmatpush.msra.mxu1 %v439_v62  ;;  %963 = vmatpush.msra.mxu2 %v44_v63  ;;  %v489_v45 = vld [vmem:[%s3192_s1 + $0xed8] sm:$0xff]  ;;  %v428_v61 = vld [vmem:[%s3192_s1 + $0xcf0] sm:$0xff] }
  0xb0   :  { %982 = vmatpush.msra.mxu3 %v248_v1  ;;  %924 = vmatpush.msra.mxu0 %v223_v2  ;;  %v105_v46 = vld [vmem:[%s3192_s1 + $0x2d8] sm:$0xff]  ;;  %v416_v2 = vld [vmem:[%s3192_s1 + $0xc90] sm:$0xff] }
  0xb1   :  { %943 = vmatpush.msra.mxu1 %v427_v3  ;;  %964 = vmatpush.msra.mxu2 %v32_v4  ;;  %v273_v48 = vld [vmem:[%s3192_s1 + $0x818] sm:$0xff]  ;;  %v2533_v3 = vld [vmem:[%s3193_s0 + $0x8] sm:$0xff] }
  0xb2   :  { %983 = vmatpush.msra.mxu3 %v236_v5  ;;  %925 = vmatpush.msra.mxu0 %v211_v6  ;;  %v477_v49 = vld [vmem:[%s3192_s1 + $0xe78] sm:$0xff] }
  0xb3   :  { %944 = vmatpush.msra.mxu1 %v415_v7  ;;  %965 = vmatpush.msra.mxu2 %v20_v54  ;;  %v93_v50 = vld [vmem:[%s3192_s1 + $0x278] sm:$0xff]  ;;  %v404_v7 = vld [vmem:[%s3192_s1 + $0xc30] sm:$0xff] }
  0xb4   :  { %984 = vmatpush.msra.mxu3 %v224_v8  ;;  %926 = vmatmul.f32.vlgmr.msra.gmra.mxu0 %v1743_v59  ;;  %v560_v59 = vld [vmem:[%s3192_s1 + $0x1110] sm:$0xff]  ;;  %v261_v52 = vld [vmem:[%s3192_s1 + $0x7b8] sm:$0xff] }
  0xb5   :  { %1030 = vmatpush.msrb.mxu2 %v393_v9  ;;  %990 = vmatpush.msrb.mxu0 %v584_v10  ;;  %v465_v53 = vld [vmem:[%s3192_s1 + $0xe18] sm:$0xff]  ;;  %v202_v10 = vld [vmem:[%s3192_s1 + $0x5e0] sm:$0xff] }
  0xb6   :  { %945 = vmatpush.msra.mxu1 %v403_v11  ;;  %985 = vmatpush.msra.mxu3 %v212_v12  ;;  %v81_v56 = vld [vmem:[%s3192_s1 + $0x218] sm:$0xff]  ;;  %v586_v11 = vld [vmem:[%s3192_s1 + $0x11e0] sm:$0xff] }
  0xb7   :  { %946 = vmatmul.f32.vlgmr.msra.gmra.mxu1 %v1762_v0  ;;  %991 = vmatpush.msrb.mxu0 %v572_v13  ;;  %v548_v0 = vld [vmem:[%s3192_s1 + $0x10b0] sm:$0xff]  ;;  %v249_v57 = vld [vmem:[%s3192_s1 + $0x758] sm:$0xff] }
  0xb8   :  { %1031 = vmatpush.msrb.mxu2 %v381_v14  ;;  %1050 = vmatpush.msrb.mxu3 %v585_v15  ;;  %v453_v58 = vld [vmem:[%s3192_s1 + $0xdb8] sm:$0xff]  ;;  %v190_v14 = vld [vmem:[%s3192_s1 + $0x580] sm:$0xff] }
  0xb9   :  { %1010 = vmatpush.msrb.mxu1 %v201_v16  ;;  %992 = vmatpush.msrb.mxu0 %v560_v59  ;;  %v69_v62 = vld [vmem:[%s3192_s1 + $0x1b8] sm:$0xff]  ;;  %v574_v15 = vld [vmem:[%s3192_s1 + $0x1180] sm:$0xff]  ;;  %v203_v16 = vld [vmem:[%s3192_s1 + $0x5e8] sm:$0xff] }
  0xba   :  { %1032 = vmatpush.msrb.mxu2 %v369_v17  ;;  %1051 = vmatpush.msrb.mxu3 %v573_v18  ;;  %v237_v63 = vld [vmem:[%s3192_s1 + $0x6f8] sm:$0xff]  ;;  %v178_v17 = vld [vmem:[%s3192_s1 + $0x520] sm:$0xff]  ;;  %v2588_v18 = vld [vmem:[%s3193_s0 + $0x10] sm:$0xff] }
  0xbb   :  { %1011 = vmatpush.msrb.mxu1 %v189_v19  ;;  %993 = vmatpush.msrb.mxu0 %v548_v0  ;;  %v441_v1 = vld [vmem:[%s3192_s1 + $0xd58] sm:$0xff]  ;;  %v394_v19 = vld [vmem:[%s3192_s1 + $0xbe0] sm:$0xff] }
  0xbc   :  { %1033 = vmatpush.msrb.mxu2 %v357_v20  ;;  %1052 = vmatpush.msrb.mxu3 %v561_v21  ;;  %v57_v4 = vld [vmem:[%s3192_s1 + $0x158] sm:$0xff]  ;;  %v562_v0 = vld [vmem:[%s3192_s1 + $0x1120] sm:$0xff]  ;;  %v191_v20 = vld [vmem:[%s3192_s1 + $0x588] sm:$0xff] }
  0xbd   :  { %1012 = vmatpush.msrb.mxu1 %v177_v22  ;;  %994 = vmatpush.msrb.mxu0 %v536_v23  ;;  %v225_v5 = vld [vmem:[%s3192_s1 + $0x698] sm:$0xff]  ;;  %v166_v21 = vld [vmem:[%s3192_s1 + $0x4c0] sm:$0xff] }
  0xbe   :  { %1034 = vmatpush.msrb.mxu2 %v345_v24  ;;  %1053 = vmatpush.msrb.mxu3 %v549_v25  ;;  %v429_v6 = vld [vmem:[%s3192_s1 + $0xcf8] sm:$0xff]  ;;  %v382_v22 = vld [vmem:[%s3192_s1 + $0xb80] sm:$0xff]  ;;  %v179_v24 = vld [vmem:[%s3192_s1 + $0x528] sm:$0xff] }
  0xbf   :  { %1013 = vmatpush.msrb.mxu1 %v165_v26  ;;  %995 = vmatpush.msrb.mxu0 %v524_v27  ;;  %v45_v54 = vld [vmem:[%s3192_s1 + $0xf8] sm:$0xff]  ;;  %v550_v23 = vld [vmem:[%s3192_s1 + $0x10c0] sm:$0xff] }
  0xc0   :  { %1035 = vmatpush.msrb.mxu2 %v333_v28  ;;  %1054 = vmatpush.msrb.mxu3 %v537_v29  ;;  %v213_v8 = vld [vmem:[%s3192_s1 + $0x638] sm:$0xff]  ;;  %v370_v25 = vld [vmem:[%s3192_s1 + $0xb20] sm:$0xff]  ;;  %v167_v28 = vld [vmem:[%s3192_s1 + $0x4c8] sm:$0xff] }
  0xc1   :  { %1014 = vmatpush.msrb.mxu1 %v153_v30  ;;  %996 = vmatpush.msrb.mxu0 %v512_v31  ;;  %v417_v9 = vld [vmem:[%s3192_s1 + $0xc98] sm:$0xff]  ;;  %v154_v26 = vld [vmem:[%s3192_s1 + $0x460] sm:$0xff] }
  0xc2   :  { %1036 = vmatpush.msrb.mxu2 %v321_v32  ;;  %1055 = vmatpush.msrb.mxu3 %v525_v33  ;;  %v33_v12 = vld [vmem:[%s3192_s1 + $0x98] sm:$0xff]  ;;  %v538_v27 = vld [vmem:[%s3192_s1 + $0x1060] sm:$0xff]  ;;  %v155_v32 = vld [vmem:[%s3192_s1 + $0x468] sm:$0xff] }
  0xc3   :  { %1015 = vmatpush.msrb.mxu1 %v141_v34  ;;  %997 = vmatpush.msrb.mxu0 %v500_v35  ;;  %v405_v13 = vld [vmem:[%s3192_s1 + $0xc38] sm:$0xff]  ;;  %v358_v29 = vld [vmem:[%s3192_s1 + $0xac0] sm:$0xff]  ;;  %v2641_v34 = vpop.f32.mrf.mxu0 }
  0xc4   :  { %1037 = vmatpush.msrb.mxu2 %v309_v36  ;;  %1056 = vmatpush.msrb.mxu3 %v513_v37  ;;  %v21_v59 = vld [vmem:[%s3192_s1 + $0x38] sm:$0xff]  ;;  %v142_v30 = vld [vmem:[%s3192_s1 + $0x400] sm:$0xff]  ;;  %v143_v37 = vld [vmem:[%s3192_s1 + $0x408] sm:$0xff] }
  0xc5   :  { %1016 = vmatpush.msrb.mxu1 %v129_v38  ;;  %998 = vmatpush.msrb.mxu0 %v488_v39  ;;  %v526_v31 = vld [vmem:[%s3192_s1 + $0x1000] sm:$0xff] }
  0xc6   :  { %1038 = vmatpush.msrb.mxu2 %v297_v40  ;;  %1057 = vmatpush.msrb.mxu3 %v501_v41  ;;  %v346_v33 = vld [vmem:[%s3192_s1 + $0xa60] sm:$0xff]  ;;  %v131_v41 = vld [vmem:[%s3192_s1 + $0x3a8] sm:$0xff] }
  0xc7   :  { %1017 = vmatpush.msrb.mxu1 %v117_v42  ;;  %999 = vmatpush.msrb.mxu0 %v476_v43  ;;  %v130_v35 = vld [vmem:[%s3192_s1 + $0x3a0] sm:$0xff] }
  0xc8   :  { %1039 = vmatpush.msrb.mxu2 %v285_v44  ;;  %1058 = vmatpush.msrb.mxu3 %v489_v45  ;;  %v514_v36 = vld [vmem:[%s3192_s1 + $0xfa0] sm:$0xff]  ;;  %v627_v45 = vpop.f32.mrf.mxu1 }
  0xc9   :  { %1018 = vmatpush.msrb.mxu1 %v105_v46  ;;  %1000 = vmatpush.msrb.mxu0 %v464_v47  ;;  %v334_v38 = vld [vmem:[%s3192_s1 + $0xa00] sm:$0xff]  ;;  %v119_v46 = vld [vmem:[%s3192_s1 + $0x348] sm:$0xff] }
  0xca   :  { %1040 = vmatpush.msrb.mxu2 %v273_v48  ;;  %1059 = vmatpush.msrb.mxu3 %v477_v49  ;;  %v118_v39 = vld [vmem:[%s3192_s1 + $0x340] sm:$0xff]  ;;  %v667_v48 = vpop.f32.mrf.mxu3 }
  0xcb   :  { %1019 = vmatpush.msrb.mxu1 %v93_v50  ;;  %1001 = vmatpush.msrb.mxu0 %v452_v51  ;;  %v502_v40 = vld [vmem:[%s3192_s1 + $0xf40] sm:$0xff] }
  0xcc   :  { %1041 = vmatpush.msrb.mxu2 %v261_v52  ;;  %1060 = vmatpush.msrb.mxu3 %v465_v53  ;;  %v322_v42 = vld [vmem:[%s3192_s1 + $0x9a0] sm:$0xff]  ;;  %v107_v52 = vld [vmem:[%s3192_s1 + $0x2e8] sm:$0xff] }
  0xcd   :  { %966 = vmatmul.f32.vlgmr.msra.gmra.mxu2 %v2512_v60  ;;  %1002 = vmatpush.msrb.mxu0 %v440_v55  ;;  %v106_v43 = vld [vmem:[%s3192_s1 + $0x2e0] sm:$0xff] }
  0xce   :  { %1020 = vmatpush.msrb.mxu1 %v81_v56  ;;  %1042 = vmatpush.msrb.mxu2 %v249_v57  ;;  %v490_v44 = vld [vmem:[%s3192_s1 + $0xee0] sm:$0xff]  ;;  %v95_v57 = vld [vmem:[%s3192_s1 + $0x288] sm:$0xff] }
  0xcf   :  { %1061 = vmatpush.msrb.mxu3 %v453_v58  ;;  %1003 = vmatpush.msrb.mxu0 %v428_v61  ;;  %v310_v47 = vld [vmem:[%s3192_s1 + $0x940] sm:$0xff]  ;;  %v687_v61 = vpop.f32.mrf.mxu0 }
  0xd0   :  { %986 = vmatmul.f32.vlgmr.msra.gmra.mxu3 %v2533_v3  ;;  %1021 = vmatpush.msrb.mxu1 %v69_v62  ;;  %v94_v50 = vld [vmem:[%s3192_s1 + $0x280] sm:$0xff] }
  0xd1   :  { %1043 = vmatpush.msrb.mxu2 %v237_v63  ;;  %1062 = vmatpush.msrb.mxu3 %v441_v1  ;;  %v478_v51 = vld [vmem:[%s3192_s1 + $0xe80] sm:$0xff]  ;;  %v83_v1 = vld [vmem:[%s3192_s1 + $0x228] sm:$0xff] }
  0xd2   :  { %1004 = vmatpush.msrb.mxu0 %v416_v2  ;;  %1022 = vmatpush.msrb.mxu1 %v57_v4  ;;  %v298_v53 = vld [vmem:[%s3192_s1 + $0x8e0] sm:$0xff] }
  0xd3   :  { %1044 = vmatpush.msrb.mxu2 %v225_v5  ;;  %1063 = vmatpush.msrb.mxu3 %v429_v6  ;;  %v82_v55 = vld [vmem:[%s3192_s1 + $0x220] sm:$0xff]  ;;  %v71_v6 = vld [vmem:[%s3192_s1 + $0x1c8] sm:$0xff] }
  0xd4   :  { %1005 = vmatpush.msrb.mxu0 %v404_v7  ;;  %1023 = vmatpush.msrb.mxu1 %v45_v54  ;;  %v647_v49 = vpop.f32.mrf.mxu2  ;;  %v466_v56 = vld [vmem:[%s3192_s1 + $0xe20] sm:$0xff] }
  0xd5   :  { %1045 = vmatpush.msrb.mxu2 %v213_v8  ;;  %1064 = vmatpush.msrb.mxu3 %v417_v9  ;;  %v286_v58 = vld [vmem:[%s3192_s1 + $0x880] sm:$0xff] }
  0xd6   :  { %1046 = vmatmul.f32.vlgmr.msrb.gmra.mxu2 %v2533_v3  ;;  %1070 = vmatpush.msra.mxu0 %v202_v10  ;;  %v70_v62 = vld [vmem:[%s3192_s1 + $0x1c0] sm:$0xff] }
  0xd7   :  { %1110 = vmatpush.msra.mxu2 %v586_v11  ;;  %1024 = vmatpush.msrb.mxu1 %v33_v12  ;;  %v454_v63 = vld [vmem:[%s3192_s1 + $0xdc0] sm:$0xff]  ;;  %v628_v11 = vadd.f32 %v627_v45, %v2641_v34  ;;  %v688_v12 = vadd.f32 %v687_v61, %v667_v48  ;;  %v372_v45 = vld [vmem:[%s3192_s1 + $0xb30] sm:$0xff] }
  0xd8   :  { %1065 = vmatpush.msrb.mxu3 %v405_v13  ;;  %1071 = vmatpush.msra.mxu0 %v190_v14  ;;  %v274_v2 = vld [vmem:[%s3192_s1 + $0x820] sm:$0xff]  ;;  %v59_v13 = vld [vmem:[%s3192_s1 + $0x168] sm:$0xff]  ;;  %v156_v48 = vld [vmem:[%s3192_s1 + $0x470] sm:$0xff] }
  0xd9   :  { %1066 = vmatmul.f32.vlgmr.msrb.gmra.mxu3 %v2588_v18  ;;  %1111 = vmatpush.msra.mxu2 %v574_v15  ;;  %v58_v4 = vld [vmem:[%s3192_s1 + $0x160] sm:$0xff]  ;;  %v707_v15 = vpop.f32.mrf.mxu1  ;;  %v336_v61 = vld [vmem:[%s3192_s1 + $0xa10] sm:$0xff] }
  0xda   :  { %1130 = vmatpush.msra.mxu3 %v203_v16  ;;  %1025 = vmatpush.msrb.mxu1 %v21_v59  ;;  %v442_v5 = vld [vmem:[%s3192_s1 + $0xd60] sm:$0xff] }
  0xdb   :  { %1072 = vmatpush.msra.mxu0 %v178_v17  ;;  %1112 = vmatpush.msra.mxu2 %v562_v0  ;;  %v262_v7 = vld [vmem:[%s3192_s1 + $0x7c0] sm:$0xff]  ;;  %v47_v17 = vld [vmem:[%s3192_s1 + $0x108] sm:$0xff] }
  0xdc   :  { %1090 = vmatpush.msra.mxu1 %v394_v19  ;;  %1131 = vmatpush.msra.mxu3 %v191_v20  ;;  %v46_v54 = vld [vmem:[%s3192_s1 + $0x100] sm:$0xff] }
  0xdd   :  { %1026 = vmatmul.f32.vlgmr.msrb.gmra.mxu1 %v2512_v60  ;;  %1073 = vmatpush.msra.mxu0 %v166_v21  ;;  %v430_v8 = vld [vmem:[%s3192_s1 + $0xd00] sm:$0xff] }
  0xde   :  { %1091 = vmatpush.msra.mxu1 %v382_v22  ;;  %1113 = vmatpush.msra.mxu2 %v550_v23  ;;  %v250_v14 = vld [vmem:[%s3192_s1 + $0x760] sm:$0xff]  ;;  %v648_v23 = vadd.f32 %v647_v49, %v628_v11  ;;  %v275_v11 = vld [vmem:[%s3192_s1 + $0x828] sm:$0xff] }
  0xdf   :  { %1132 = vmatpush.msra.mxu3 %v179_v24  ;;  %1006 = vmatmul.f32.vlgmr.msrb.gmra.mxu0 %v2588_v18  ;;  %v34_v16 = vld [vmem:[%s3192_s1 + $0xa0] sm:$0xff]  ;;  %v708_v24 = vadd.f32 %v707_v15, %v688_v12  ;;  %v503_v12 = vld [vmem:[%s3192_s1 + $0xf48] sm:$0xff] }
  0xe0   :  { %1092 = vmatpush.msra.mxu1 %v370_v25  ;;  %1074 = vmatpush.msra.mxu0 %v154_v26  ;;  %v418_v59 = vld [vmem:[%s3192_s1 + $0xca0] sm:$0xff]  ;;  %v35_v25 = vld [vmem:[%s3192_s1 + $0xa8] sm:$0xff] }
  0xe1   :  { %1114 = vmatpush.msra.mxu2 %v538_v27  ;;  %1133 = vmatpush.msra.mxu3 %v167_v28  ;;  %v238_v0 = vld [vmem:[%s3192_s1 + $0x700] sm:$0xff]  ;;  %v395_v26 = vld [vmem:[%s3192_s1 + $0xbe8] sm:$0xff]  ;;  %v204_v27 = vld [vmem:[%s3192_s1 + $0x5f0] sm:$0xff]  ;;  %v1311_v34 = vmul.f32 %v2533_v3, %v708_v24 }
  0xe2   :  { %1093 = vmatpush.msra.mxu1 %v358_v29  ;;  %1075 = vmatpush.msra.mxu0 %v142_v30  ;;  %v22_v20 = vld [vmem:[%s3192_s1 + $0x40] sm:$0xff]  ;;  %v23_v30 = vld [vmem:[%s3192_s1 + $0x48] sm:$0xff]  ;;  %v48_v24 = vld [vmem:[%s3192_s1 + $0x110] sm:$0xff] }
  0xe3   :  { %1115 = vmatpush.msra.mxu2 %v526_v31  ;;  %1134 = vmatpush.msra.mxu3 %v155_v32  ;;  %v406_v21 = vld [vmem:[%s3192_s1 + $0xc40] sm:$0xff]  ;;  %v383_v31 = vld [vmem:[%s3192_s1 + $0xb88] sm:$0xff]  ;;  %v192_v32 = vld [vmem:[%s3192_s1 + $0x590] sm:$0xff] }
  0xe4   :  { %1094 = vmatpush.msra.mxu1 %v346_v33  ;;  %1076 = vmatpush.msra.mxu0 %v130_v35  ;;  %v226_v29 = vld [vmem:[%s3192_s1 + $0x6a0] sm:$0xff]  ;;  %v1310_v33 = vmul.f32 %v2512_v60, %v648_v23  ;;  %v396_v35 = vld [vmem:[%s3192_s1 + $0xbf0] sm:$0xff]  ;;  %v263_v15 = vld [vmem:[%s3192_s1 + $0x7c8] sm:$0xff] }
  0xe5   :  { %1116 = vmatpush.msra.mxu2 %v514_v36  ;;  %1135 = vmatpush.msra.mxu3 %v143_v37  ;;  %v214_v36 = vld [vmem:[%s3192_s1 + $0x640] sm:$0xff]  ;;  %v371_v37 = vld [vmem:[%s3192_s1 + $0xb28] sm:$0xff] }
  0xe6   :  { %1095 = vmatpush.msra.mxu1 %v334_v38  ;;  %1077 = vmatpush.msra.mxu0 %v118_v39  ;;  %v727_v9 = vpop.f32.mrf.mxu2  ;;  %v180_v38 = vld [vmem:[%s3192_s1 + $0x530] sm:$0xff]  ;;  %v467_v23 = vld [vmem:[%s3192_s1 + $0xe28] sm:$0xff] }
  0xe7   :  { %1117 = vmatpush.msra.mxu2 %v502_v40  ;;  %1136 = vmatpush.msra.mxu3 %v131_v41  ;;  %v384_v40 = vld [vmem:[%s3192_s1 + $0xb90] sm:$0xff]  ;;  %v587_v41 = vld [vmem:[%s3192_s1 + $0x11e8] sm:$0xff] }
  0xe8   :  { %1096 = vmatpush.msra.mxu1 %v322_v42  ;;  %1078 = vmatpush.msra.mxu0 %v106_v43  ;;  %v747_v10 = vpop.f32.mrf.mxu3  ;;  %v359_v42 = vld [vmem:[%s3192_s1 + $0xac8] sm:$0xff]  ;;  %v168_v43 = vld [vmem:[%s3192_s1 + $0x4d0] sm:$0xff] }
  0xe9   :  { %1118 = vmatpush.msra.mxu2 %v490_v44  ;;  %1137 = vmatpush.msra.mxu3 %v119_v46  ;;  %v748_v19 = vadd.f32 %v747_v10, %v727_v9  ;;  %v1313_v44 = vadd.f32 %v1311_v34, %v1310_v33  ;;  %v575_v46 = vld [vmem:[%s3192_s1 + $0x1188] sm:$0xff]  ;;  %v96_v9 = vld [vmem:[%s3192_s1 + $0x290] sm:$0xff] }
  0xea   :  { %1097 = vmatpush.msra.mxu1 %v310_v47  ;;  %1079 = vmatpush.msra.mxu0 %v94_v50  ;;  %v347_v47 = vld [vmem:[%s3192_s1 + $0xa68] sm:$0xff]  ;;  %v360_v50 = vld [vmem:[%s3192_s1 + $0xad0] sm:$0xff] }
  0xeb   :  { %1119 = vmatpush.msra.mxu2 %v478_v51  ;;  %1138 = vmatpush.msra.mxu3 %v107_v52  ;;  %v335_v51 = vld [vmem:[%s3192_s1 + $0xa08] sm:$0xff]  ;;  %v300_v10 = vld [vmem:[%s3192_s1 + $0x8f0] sm:$0xff] }
  0xec   :  { %1098 = vmatpush.msra.mxu1 %v298_v53  ;;  %1080 = vmatpush.msra.mxu0 %v82_v55  ;;  %v563_v52 = vld [vmem:[%s3192_s1 + $0x1128] sm:$0xff]  ;;  %v144_v53 = vld [vmem:[%s3192_s1 + $0x410] sm:$0xff] }
  0xed   :  { %1120 = vmatpush.msra.mxu2 %v466_v56  ;;  %1139 = vmatpush.msra.mxu3 %v95_v57  ;;  %v348_v55 = vld [vmem:[%s3192_s1 + $0xa70] sm:$0xff]  ;;  %v323_v56 = vld [vmem:[%s3192_s1 + $0x9a8] sm:$0xff] }
  0xee   :  { %1099 = vmatpush.msra.mxu1 %v286_v58  ;;  %1081 = vmatpush.msra.mxu0 %v70_v62  ;;  %v767_v22 = vpop.f32.mrf.mxu0  ;;  %v551_v57 = vld [vmem:[%s3192_s1 + $0x10c8] sm:$0xff]  ;;  %v132_v58 = vld [vmem:[%s3192_s1 + $0x3b0] sm:$0xff] }
  0xef   :  { %1121 = vmatpush.msra.mxu2 %v454_v63  ;;  %1140 = vmatpush.msra.mxu3 %v83_v1  ;;  %v768_v28 = vadd.f32 %v767_v22, %v748_v19  ;;  %v311_v62 = vld [vmem:[%s3192_s1 + $0x948] sm:$0xff]  ;;  %v120_v1 = vld [vmem:[%s3192_s1 + $0x350] sm:$0xff] }
  0xf0   :  { %1100 = vmatpush.msra.mxu1 %v274_v2  ;;  %1082 = vmatpush.msra.mxu0 %v58_v4  ;;  %v539_v63 = vld [vmem:[%s3192_s1 + $0x1068] sm:$0xff]  ;;  %v324_v2 = vld [vmem:[%s3192_s1 + $0x9b0] sm:$0xff] }
  0xf1   :  { %1122 = vmatpush.msra.mxu2 %v442_v5  ;;  %1141 = vmatpush.msra.mxu3 %v71_v6  ;;  %v1312_v39 = vmul.f32 %v2588_v18, %v768_v28  ;;  %v299_v4 = vld [vmem:[%s3192_s1 + $0x8e8] sm:$0xff]  ;;  %v108_v6 = vld [vmem:[%s3192_s1 + $0x2f0] sm:$0xff] }
  0xf2   :  { %1101 = vmatpush.msra.mxu1 %v262_v7  ;;  %1083 = vmatpush.msra.mxu0 %v46_v54  ;;  %v527_v5 = vld [vmem:[%s3192_s1 + $0x1008] sm:$0xff]  ;;  %v312_v7 = vld [vmem:[%s3192_s1 + $0x950] sm:$0xff] }
  0xf3   :  { %1123 = vmatpush.msra.mxu2 %v430_v8  ;;  %1142 = vmatpush.msra.mxu3 %v59_v13  ;;  %v1314_v49 = vadd.f32 %v1313_v44, %v1312_v39  ;;  %v287_v54 = vld [vmem:[%s3192_s1 + $0x888] sm:$0xff]  ;;  %v84_v13 = vld [vmem:[%s3192_s1 + $0x230] sm:$0xff]  ;;  %v385_v39 = vld [vmem:[%s3192_s1 + $0xb98] sm:$0xff] }
  0xf4   :  { %1102 = vmatpush.msra.mxu1 %v250_v14  ;;  %1084 = vmatpush.msra.mxu0 %v34_v16  ;;  %v515_v8 = vld [vmem:[%s3192_s1 + $0xfa8] sm:$0xff]  ;;  %v288_v14 = vld [vmem:[%s3192_s1 + $0x890] sm:$0xff]  ;;  %v577_v44 = vld [vmem:[%s3192_s1 + $0x1198] sm:$0xff] }
  0xf5   :  { %1124 = vmatpush.msra.mxu2 %v418_v59  ;;  %1143 = vmatpush.msra.mxu3 %v47_v17  ;;  %v491_v16 = vld [vmem:[%s3192_s1 + $0xee8] sm:$0xff]  ;;  %v72_v59 = vld [vmem:[%s3192_s1 + $0x1d0] sm:$0xff] }
  0xf6   :  { %1103 = vmatpush.msra.mxu1 %v238_v0  ;;  %1085 = vmatpush.msra.mxu0 %v22_v20  ;;  %v276_v17 = vld [vmem:[%s3192_s1 + $0x830] sm:$0xff]  ;;  %v251_v19 = vld [vmem:[%s3192_s1 + $0x768] sm:$0xff] }
  0xf7   :  { %1125 = vmatpush.msra.mxu2 %v406_v21  ;;  %1144 = vmatpush.msra.mxu3 %v35_v25  ;;  %v479_v0 = vld [vmem:[%s3192_s1 + $0xe88] sm:$0xff]  ;;  %v60_v20 = vld [vmem:[%s3192_s1 + $0x170] sm:$0xff] }
  0xf8   :  { %1126 = vmatmul.f32.vlgmr.msra.gmra.mxu2 %v2588_v18  ;;  %1150 = vmatpush.msrb.mxu0 %v395_v26  ;;  %v264_v21 = vld [vmem:[%s3192_s1 + $0x7d0] sm:$0xff]  ;;  %v239_v22 = vld [vmem:[%s3192_s1 + $0x708] sm:$0xff] }
  0xf9   :  { %1190 = vmatpush.msrb.mxu2 %v204_v27  ;;  %1104 = vmatpush.msra.mxu1 %v226_v29  ;;  %v252_v25 = vld [vmem:[%s3192_s1 + $0x770] sm:$0xff]  ;;  %v227_v26 = vld [vmem:[%s3192_s1 + $0x6a8] sm:$0xff] }
  0xfa   :  { %1145 = vmatpush.msra.mxu3 %v23_v30  ;;  %1151 = vmatpush.msrb.mxu0 %v383_v31  ;;  %v455_v27 = vld [vmem:[%s3192_s1 + $0xdc8] sm:$0xff]  ;;  %v36_v28 = vld [vmem:[%s3192_s1 + $0xb0] sm:$0xff] }
  0xfb   :  { %1191 = vmatpush.msrb.mxu2 %v192_v32  ;;  %1105 = vmatpush.msra.mxu1 %v214_v36  ;;  %v240_v29 = vld [vmem:[%s3192_s1 + $0x710] sm:$0xff]  ;;  %v215_v30 = vld [vmem:[%s3192_s1 + $0x648] sm:$0xff] }
  0xfc   :  { %1210 = vmatpush.msrb.mxu3 %v396_v35  ;;  %1086 = vmatmul.f32.vlgmr.msra.gmra.mxu0 %v2512_v60  ;;  %v443_v31 = vld [vmem:[%s3192_s1 + $0xd68] sm:$0xff]  ;;  %v24_v32 = vld [vmem:[%s3192_s1 + $0x50] sm:$0xff]  ;;  %v397_v35 = vld [vmem:[%s3192_s1 + $0xbf8] sm:$0xff] }
  0xfd   :  { %1106 = vmatmul.f32.vlgmr.msra.gmra.mxu1 %v2533_v3  ;;  %1152 = vmatpush.msrb.mxu0 %v371_v37  ;;  %v228_v33 = vld [vmem:[%s3192_s1 + $0x6b0] sm:$0xff]  ;;  %v431_v36 = vld [vmem:[%s3192_s1 + $0xd08] sm:$0xff] }
  0xfe   :  { %1192 = vmatpush.msrb.mxu2 %v180_v38  ;;  %1211 = vmatpush.msrb.mxu3 %v384_v40  ;;  %v588_v34 = vld [vmem:[%s3192_s1 + $0x11f0] sm:$0xff]  ;;  %v589_v40 = vld [vmem:[%s3192_s1 + $0x11f8] sm:$0xff] }
  0xff   :  { %1170 = vmatpush.msrb.mxu1 %v587_v41  ;;  %1153 = vmatpush.msrb.mxu0 %v359_v42  ;;  %v216_v37 = vld [vmem:[%s3192_s1 + $0x650] sm:$0xff]  ;;  %v419_v41 = vld [vmem:[%s3192_s1 + $0xca8] sm:$0xff] }
 0x100   :  { %1193 = vmatpush.msrb.mxu2 %v168_v43  ;;  %1212 = vmatpush.msrb.mxu3 %v372_v45  ;;  %v576_v38 = vld [vmem:[%s3192_s1 + $0x1190] sm:$0xff]  ;;  %v373_v43 = vld [vmem:[%s3192_s1 + $0xb38] sm:$0xff]  ;;  %v407_v45 = vld [vmem:[%s3192_s1 + $0xc48] sm:$0xff] }
 0x101   :  { %1171 = vmatpush.msrb.mxu1 %v575_v46  ;;  %1154 = vmatpush.msrb.mxu0 %v347_v47  ;;  %v564_v42 = vld [vmem:[%s3192_s1 + $0x1130] sm:$0xff]  ;;  %v205_v47 = vld [vmem:[%s3192_s1 + $0x5f8] sm:$0xff] }
 0x102   :  { %1194 = vmatpush.msrb.mxu2 %v156_v48  ;;  %1213 = vmatpush.msrb.mxu3 %v360_v50  ;;  %v552_v46 = vld [vmem:[%s3192_s1 + $0x10d0] sm:$0xff]  ;;  %v361_v48 = vld [vmem:[%s3192_s1 + $0xad8] sm:$0xff] }
 0x103   :  { %1315 = vadd.xlane.f32.xlu0 %v1314_v49  ;;  %1155 = vmatpush.msrb.mxu0 %v335_v51  ;;  %v565_v50 = vld [vmem:[%s3192_s1 + $0x1138] sm:$0xff]  ;;  %v540_v51 = vld [vmem:[%s3192_s1 + $0x1070] sm:$0xff] }
 0x104   :  { %1172 = vmatpush.msrb.mxu1 %v563_v52  ;;  %1195 = vmatpush.msrb.mxu2 %v144_v53  ;;  %v193_v52 = vld [vmem:[%s3192_s1 + $0x598] sm:$0xff] }
 0x105   :  { %1214 = vmatpush.msrb.mxu3 %v348_v55  ;;  %1156 = vmatpush.msrb.mxu0 %v323_v56  ;;  %v349_v53 = vld [vmem:[%s3192_s1 + $0xa78] sm:$0xff]  ;;  %v528_v56 = vld [vmem:[%s3192_s1 + $0x1010] sm:$0xff] }
 0x106   :  { %1173 = vmatpush.msrb.mxu1 %v551_v57  ;;  %1196 = vmatpush.msrb.mxu2 %v132_v58  ;;  %v553_v55 = vld [vmem:[%s3192_s1 + $0x10d8] sm:$0xff] }
 0x107   :  { %1215 = vmatpush.msrb.mxu3 %v336_v61  ;;  %1157 = vmatpush.msrb.mxu0 %v311_v62  ;;  %v181_v58 = vld [vmem:[%s3192_s1 + $0x538] sm:$0xff] }
 0x108   :  { %1174 = vmatpush.msrb.mxu1 %v539_v63  ;;  %1197 = vmatpush.msrb.mxu2 %v120_v1  ;;  %v337_v61 = vld [vmem:[%s3192_s1 + $0xa18] sm:$0xff]  ;;  %v516_v63 = vld [vmem:[%s3192_s1 + $0xfb0] sm:$0xff] }
 0x109   :  { %1216 = vmatpush.msrb.mxu3 %v324_v2  ;;  %1158 = vmatpush.msrb.mxu0 %v299_v4  ;;  %v541_v62 = vld [vmem:[%s3192_s1 + $0x1078] sm:$0xff] }
 0x10a   :  { %1175 = vmatpush.msrb.mxu1 %v527_v5  ;;  %1198 = vmatpush.msrb.mxu2 %v108_v6  ;;  %v169_v1 = vld [vmem:[%s3192_s1 + $0x4d8] sm:$0xff]  ;;  %v504_v5 = vld [vmem:[%s3192_s1 + $0xf50] sm:$0xff] }
 0x10b   :  { %1217 = vmatpush.msrb.mxu3 %v312_v7  ;;  %1159 = vmatpush.msrb.mxu0 %v287_v54  ;;  %v325_v2 = vld [vmem:[%s3192_s1 + $0x9b8] sm:$0xff] }
 0x10c   :  { %1176 = vmatpush.msrb.mxu1 %v515_v8  ;;  %1199 = vmatpush.msrb.mxu2 %v96_v9  ;;  %v807_v57 = vpop.f32.mrf.mxu2  ;;  %v529_v4 = vld [vmem:[%s3192_s1 + $0x1018] sm:$0xff]  ;;  %v492_v8 = vld [vmem:[%s3192_s1 + $0xef0] sm:$0xff] }
 0x10d   :  { %1218 = vmatpush.msrb.mxu3 %v300_v10  ;;  %1160 = vmatpush.msrb.mxu0 %v275_v11  ;;  %v787_v49 = vpop.f32.mrf.mxu1  ;;  %v157_v6 = vld [vmem:[%s3192_s1 + $0x478] sm:$0xff] }
 0x10e   :  { %1177 = vmatpush.msrb.mxu1 %v503_v12  ;;  %1200 = vmatpush.msrb.mxu2 %v84_v13  ;;  %v313_v7 = vld [vmem:[%s3192_s1 + $0x958] sm:$0xff] }
 0x10f   :  { %1219 = vmatpush.msrb.mxu3 %v288_v14  ;;  %1161 = vmatpush.msrb.mxu0 %v263_v15  ;;  %v517_v54 = vld [vmem:[%s3192_s1 + $0xfb8] sm:$0xff]  ;;  %v480_v15 = vld [vmem:[%s3192_s1 + $0xe90] sm:$0xff] }
 0x110   :  { %1178 = vmatpush.msrb.mxu1 %v491_v16  ;;  %1201 = vmatpush.msrb.mxu2 %v72_v59  ;;  %v145_v11 = vld [vmem:[%s3192_s1 + $0x418] sm:$0xff] }
 0x111   :  { %1220 = vmatpush.msrb.mxu3 %v276_v17  ;;  %1162 = vmatpush.msrb.mxu0 %v251_v19  ;;  %v301_v12 = vld [vmem:[%s3192_s1 + $0x8f8] sm:$0xff]  ;;  %v808_v17 = vadd.f32 %v807_v57, %v787_v49 }
 0x112   :  { %1179 = vmatpush.msrb.mxu1 %v479_v0  ;;  %1202 = vmatpush.msrb.mxu2 %v60_v20  ;;  %v505_v14 = vld [vmem:[%s3192_s1 + $0xf58] sm:$0xff]  ;;  %v468_v20 = vld [vmem:[%s3192_s1 + $0xe30] sm:$0xff] }
 0x113   :  { %1221 = vmatpush.msrb.mxu3 %v264_v21  ;;  %1163 = vmatpush.msrb.mxu0 %v239_v22  ;;  %v133_v16 = vld [vmem:[%s3192_s1 + $0x3b8] sm:$0xff] }
 0x114   :  { %1180 = vmatpush.msrb.mxu1 %v467_v23  ;;  %1203 = vmatpush.msrb.mxu2 %v48_v24  ;;  %v289_v59 = vld [vmem:[%s3192_s1 + $0x898] sm:$0xff] }
 0x115   :  { %1222 = vmatpush.msrb.mxu3 %v252_v25  ;;  %1164 = vmatpush.msrb.mxu0 %v227_v26  ;;  %v493_v0 = vld [vmem:[%s3192_s1 + $0xef8] sm:$0xff]  ;;  %v456_v25 = vld [vmem:[%s3192_s1 + $0xdd0] sm:$0xff] }
 0x116   :  { %1181 = vmatpush.msrb.mxu1 %v455_v27  ;;  %1204 = vmatpush.msrb.mxu2 %v36_v28  ;;  %v847_v9 = vpop.f32.mrf.mxu0  ;;  %v867_v10 = vpop.f32.mrf.mxu1  ;;  %v121_v22 = vld [vmem:[%s3192_s1 + $0x358] sm:$0xff] }
 0x117   :  { %1223 = vmatpush.msrb.mxu3 %v240_v29  ;;  %1165 = vmatpush.msrb.mxu0 %v215_v30  ;;  %v827_v13 = vpop.f32.mrf.mxu3  ;;  %v868_v19 = vadd.f32 %v867_v10, %v847_v9  ;;  %v887_v21 = vpop.f32.mrf.mxu2  ;;  %v277_v23 = vld [vmem:[%s3192_s1 + $0x838] sm:$0xff] }
 0x118   :  { %1182 = vmatpush.msrb.mxu1 %v443_v31  ;;  %1205 = vmatpush.msrb.mxu2 %v24_v32  ;;  %v481_v24 = vld [vmem:[%s3192_s1 + $0xe98] sm:$0xff]  ;;  %v828_v28 = vadd.f32 %v827_v13, %v808_v17  ;;  %v444_v31 = vld [vmem:[%s3192_s1 + $0xd70] sm:$0xff] }
 0x119   :  { %1224 = vmatpush.msrb.mxu3 %v228_v33  ;;  %1230 = vmatpush.msra.mxu0 %v588_v34  ;;  %v109_v26 = vld [vmem:[%s3192_s1 + $0x2f8] sm:$0xff]  ;;  %v888_v29 = vadd.f32 %v887_v21, %v868_v19 }
 0x11a   :  { %1270 = vmatpush.msra.mxu2 %v397_v35  ;;  %1183 = vmatpush.msrb.mxu1 %v431_v36  ;;  %v265_v27 = vld [vmem:[%s3192_s1 + $0x7d8] sm:$0xff] }
 0x11b   :  { %1225 = vmatpush.msrb.mxu3 %v216_v37  ;;  %1231 = vmatpush.msra.mxu0 %v576_v38  ;;  %v469_v30 = vld [vmem:[%s3192_s1 + $0xe38] sm:$0xff]  ;;  %v432_v37 = vld [vmem:[%s3192_s1 + $0xd10] sm:$0xff] }
 0x11c   :  { %1146 = vmatmul.f32.vlgmr.msra.gmra.mxu3 %v2512_v60  ;;  %1271 = vmatpush.msra.mxu2 %v385_v39  ;;  %v97_v32 = vld [vmem:[%s3192_s1 + $0x298] sm:$0xff]  ;;  %v1319_v39 = vmul.f32 %v2512_v60, %v828_v28 }
 0x11d   :  { %1290 = vmatpush.msra.mxu3 %v589_v40  ;;  %1184 = vmatpush.msrb.mxu1 %v419_v41  ;;  %v253_v33 = vld [vmem:[%s3192_s1 + $0x778] sm:$0xff]  ;;  %v1320_v40 = vmul.f32 %v2533_v3, %v888_v29 }
 0x11e   :  { %1232 = vmatpush.msra.mxu0 %v564_v42  ;;  %1272 = vmatpush.msra.mxu2 %v373_v43  ;;  %v457_v36 = vld [vmem:[%s3192_s1 + $0xdd8] sm:$0xff] }
 0x11f   :  { %1291 = vmatpush.msra.mxu3 %v577_v44  ;;  %1185 = vmatpush.msrb.mxu1 %v407_v45  ;;  %v85_v41 = vld [vmem:[%s3192_s1 + $0x238] sm:$0xff]  ;;  %v420_v45 = vld [vmem:[%s3192_s1 + $0xcb0] sm:$0xff] }
 0x120   :  { %1233 = vmatpush.msra.mxu0 %v552_v46  ;;  %1273 = vmatpush.msra.mxu2 %v361_v48  ;;  %v241_v42 = vld [vmem:[%s3192_s1 + $0x718] sm:$0xff] }
 0x121   :  { %1250 = vmatpush.msra.mxu1 %v205_v47  ;;  %1292 = vmatpush.msra.mxu3 %v565_v50  ;;  %v445_v44 = vld [vmem:[%s3192_s1 + $0xd78] sm:$0xff]  ;;  %v408_v50 = vld [vmem:[%s3192_s1 + $0xc50] sm:$0xff] }
 0x122   :  { %1166 = vmatmul.f32.vlgmr.msrb.gmra.mxu0 %v2533_v3  ;;  %1274 = vmatpush.msra.mxu2 %v349_v53  ;;  %v73_v47 = vld [vmem:[%s3192_s1 + $0x1d8] sm:$0xff] }
 0x123   :  { %1234 = vmatpush.msra.mxu0 %v540_v51  ;;  %1251 = vmatpush.msra.mxu1 %v193_v52  ;;  %v229_v48 = vld [vmem:[%s3192_s1 + $0x6b8] sm:$0xff] }
 0x124   :  { %1293 = vmatpush.msra.mxu3 %v553_v55  ;;  %1186 = vmatmul.f32.vlgmr.msrb.gmra.mxu1 %v2588_v18  ;;  %v433_v49 = vld [vmem:[%s3192_s1 + $0xd18] sm:$0xff]  ;;  %v1322_v55 = vadd.f32 %v1320_v40, %v1319_v39 }
 0x125   :  { %1235 = vmatpush.msra.mxu0 %v528_v56  ;;  %1252 = vmatpush.msra.mxu1 %v181_v58  ;;  %v61_v52 = vld [vmem:[%s3192_s1 + $0x178] sm:$0xff] }
 0x126   :  { %1275 = vmatpush.msra.mxu2 %v337_v61  ;;  %1294 = vmatpush.msra.mxu3 %v541_v62  ;;  %v217_v53 = vld [vmem:[%s3192_s1 + $0x658] sm:$0xff] }
 0x127   :  { %1236 = vmatpush.msra.mxu0 %v516_v63  ;;  %1253 = vmatpush.msra.mxu1 %v169_v1  ;;  %v421_v56 = vld [vmem:[%s3192_s1 + $0xcb8] sm:$0xff] }
 0x128   :  { %1276 = vmatpush.msra.mxu2 %v325_v2  ;;  %1295 = vmatpush.msra.mxu3 %v529_v4  ;;  %v49_v57 = vld [vmem:[%s3192_s1 + $0x118] sm:$0xff] }
 0x129   :  { %1237 = vmatpush.msra.mxu0 %v504_v5  ;;  %1254 = vmatpush.msra.mxu1 %v157_v6  ;;  %v409_v61 = vld [vmem:[%s3192_s1 + $0xc58] sm:$0xff] }
 0x12a   :  { %1277 = vmatpush.msra.mxu2 %v313_v7  ;;  %1296 = vmatpush.msra.mxu3 %v517_v54  ;;  %v37_v62 = vld [vmem:[%s3192_s1 + $0xb8] sm:$0xff] }
 0x12b   :  { %1238 = vmatpush.msra.mxu0 %v492_v8  ;;  %1255 = vmatpush.msra.mxu1 %v145_v11  ;;  %v25_v63 = vld [vmem:[%s3192_s1 + $0x58] sm:$0xff] }
 0x12c   :  { %1278 = vmatpush.msra.mxu2 %v301_v12  ;;  %1297 = vmatpush.msra.mxu3 %v505_v14 }
 0x12d   :  { %1239 = vmatpush.msra.mxu0 %v480_v15  ;;  %1256 = vmatpush.msra.mxu1 %v133_v16 }
 0x12e   :  { %1279 = vmatpush.msra.mxu2 %v289_v59  ;;  %1298 = vmatpush.msra.mxu3 %v493_v0 }
 0x12f   :  { %1240 = vmatpush.msra.mxu0 %v468_v20  ;;  %1257 = vmatpush.msra.mxu1 %v121_v22 }
 0x130   :  { %1280 = vmatpush.msra.mxu2 %v277_v23  ;;  %1299 = vmatpush.msra.mxu3 %v481_v24 }
 0x131   :  { %1241 = vmatpush.msra.mxu0 %v456_v25  ;;  %1258 = vmatpush.msra.mxu1 %v109_v26  ;;  %v907_v34 = vpop.f32.mrf.mxu3  ;;  %v927_v35 = vpop.f32.mrf.mxu0 }
 0x132   :  { %1281 = vmatpush.msra.mxu2 %v265_v27  ;;  %1300 = vmatpush.msra.mxu3 %v469_v30  ;;  %v928_v38 = vadd.f32 %v927_v35, %v907_v34 }
 0x133   :  { %1206 = vmatmul.f32.vlgmr.msrb.gmra.mxu2 %v2512_v60  ;;  %1226 = vmatmul.f32.vlgmr.msrb.gmra.mxu3 %v2533_v3 }
 0x134   :  { %1242 = vmatpush.msra.mxu0 %v444_v31  ;;  %v947_v43 = vpop.f32.mrf.mxu1  ;;  %1259 = vmatpush.msra.mxu1 %v97_v32 }
 0x135   :  { %1282 = vmatpush.msra.mxu2 %v253_v33  ;;  %v948_v46 = vadd.f32 %v947_v43, %v928_v38  ;;  %1301 = vmatpush.msra.mxu3 %v457_v36  ;;  %v1353_v36 = vld [vmem:[%s3193_s0] sm:$0xff] }
 0x136   :  { %1243 = vmatpush.msra.mxu0 %v432_v37  ;;  %1260 = vmatpush.msra.mxu1 %v85_v41 }
 0x137   :  { %1283 = vmatpush.msra.mxu2 %v241_v42  ;;  %v1321_v51 = vmul.f32 %v2588_v18, %v948_v46  ;;  %1302 = vmatpush.msra.mxu3 %v445_v44 }
 0x138   :  { %1244 = vmatpush.msra.mxu0 %v420_v45  ;;  %1261 = vmatpush.msra.mxu1 %v73_v47 }
 0x139   :  { %1284 = vmatpush.msra.mxu2 %v229_v48  ;;  %1303 = vmatpush.msra.mxu3 %v433_v49  ;;  %v1323_v58 = vadd.f32 %v1322_v55, %v1321_v51 }
 0x13a   :  { %1245 = vmatpush.msra.mxu0 %v408_v50  ;;  %1262 = vmatpush.msra.mxu1 %v61_v52 }
 0x13b   :  { %1285 = vmatpush.msra.mxu2 %v217_v53  ;;  %1304 = vmatpush.msra.mxu3 %v421_v56 }
 0x13c   :  { %1246 = vmatmul.f32.vlgmr.msra.gmra.mxu0 %v2588_v18  ;;  %1286 = vmatmul.f32.vlgmr.msra.gmra.mxu2 %v2533_v3 }
 0x13d   :  { %1263 = vmatpush.msra.mxu1 %v49_v57  ;;  %1305 = vmatpush.msra.mxu3 %v409_v61 }
 0x13e   :  { %1324 = vadd.xlane.f32.xlu0 %v1323_v58  ;;  %1306 = vmatmul.f32.vlgmr.msra.gmra.mxu3 %v2588_v18 }
 0x13f   :  { %1264 = vmatpush.msra.mxu1 %v37_v62 }
 0x141   :  { %1265 = vmatpush.msra.mxu1 %v25_v63 }
 0x142   :  { %1266 = vmatmul.f32.vlgmr.msra.gmra.mxu1 %v2512_v60 }
 0x150   :  { %v967_v1 = vpop.f32.mrf.mxu2 }
 0x153   :  { %v987_v2 = vpop.f32.mrf.mxu3 }
 0x154   :  { %v988_v7 = vadd.f32 %v987_v2, %v967_v1 }
 0x159   :  { %v1047_v5 = vpop.f32.mrf.mxu2 }
 0x15a   :  { %v1027_v4 = vpop.f32.mrf.mxu1 }
 0x15b   :  { %v1048_v54 = vadd.f32 %v1047_v5, %v1027_v4 }
 0x15c   :  { %v1007_v6 = vpop.f32.mrf.mxu0  ;;  %v1067_v8 = vpop.f32.mrf.mxu3 }
 0x15d   :  { %v1008_v10 = vadd.f32 %v1007_v6, %v988_v7  ;;  %v1068_v11 = vadd.f32 %v1067_v8, %v1048_v54 }
 0x15f   :  { %v1328_v14 = vmul.f32 %v2512_v60, %v1008_v10  ;;  %v1329_v15 = vmul.f32 %v2533_v3, %v1068_v11 }
 0x161   :  { %v1331_v0 = vadd.f32 %v1329_v15, %v1328_v14 }
 0x176   :  { %v1316_v9 = vpop.xlane.xlu0 %1315 }
 0x177   :  { %1318 = vst.msk [vmem:[%s3194_s2] sm:$0xff] %vm1317_vm0, %v1316_v9 }
 0x179   :  { %v1087_v12 = vpop.f32.mrf.mxu0 }
 0x17a   :  { %v1107_v13 = vpop.f32.mrf.mxu1 }
 0x17b   :  { %v1108_v16 = vadd.f32 %v1107_v13, %v1087_v12  ;;  %v1127_v59 = vpop.f32.mrf.mxu2 }
 0x17d   :  { %v1128_v17 = vadd.f32 %v1127_v59, %v1108_v16 }
 0x17f   :  { %v1330_v19 = vmul.f32 %v2588_v18, %v1128_v17 }
 0x181   :  { %v1332_v20 = vadd.f32 %v1331_v0, %v1330_v19 }
 0x183   :  { %1333 = vadd.xlane.f32.xlu1 %v1332_v20 }
 0x19f   :  { %v1147_v21 = vpop.f32.mrf.mxu3  ;;  %v1167_v23 = vpop.f32.mrf.mxu0 }
 0x1a0   :  { %v1168_v28 = vadd.f32 %v1167_v23, %v1147_v21 }
 0x1a1   :  { %v1187_v60 = vpop.f32.mrf.mxu1 }
 0x1a2   :  { %v1188_v30 = vadd.f32 %v1187_v60, %v1168_v28 }
 0x1a4   :  { %v1337_v37 = vmul.f32 %v1353_v36, %v1188_v30 }
 0x1b1   :  { %v1325_v22 = vpop.xlane.xlu0 %1324 }
 0x1b2   :  { %1327 = vst.msk [vmem:[%s3194_s2] sm:$0xff] %vm1326_vm1, %v1325_v22 }
 0x1b6   :  { %v1207_v24 = vpop.f32.mrf.mxu2  ;;  %v1227_v25 = vpop.f32.mrf.mxu3 }
 0x1b7   :  { %v1228_v26 = vadd.f32 %v1227_v25, %v1207_v24 }
 0x1b9   :  { %v1247_v27 = vpop.f32.mrf.mxu0 }
 0x1ba   :  { %v1248_v29 = vadd.f32 %v1247_v27, %v1228_v26 }
 0x1bc   :  { %v1338_v33 = vmul.f32 %v2533_v3, %v1248_v29 }
 0x1be   :  { %v1340_v40 = vadd.f32 %v1338_v33, %v1337_v37 }
 0x1bf   :  { %v1267_v31 = vpop.f32.mrf.mxu1  ;;  %v1287_v32 = vpop.f32.mrf.mxu2 }
 0x1c0   :  { %v1288_v34 = vadd.f32 %v1287_v32, %v1267_v31 }
 0x1c1   :  { %v1307_v35 = vpop.f32.mrf.mxu3 }
 0x1c2   :  { %v1308_v38 = vadd.f32 %v1307_v35, %v1288_v34 }
 0x1c4   :  { %v1339_v39 = vmul.f32 %v2588_v18, %v1308_v38 }
 0x1c6   :  { %v1341_v41 = vadd.f32 %v1340_v40, %v1339_v39 }
 0x1c8   :  { %1342 = vadd.xlane.f32.xlu1 %v1341_v41 }
 0x1f6   :  { %v1334_v42 = vpop.xlane.xlu1 %1333 }
 0x1f7   :  { %1336 = vst.msk [vmem:[%s3194_s2] sm:$0xff] %vm1335_vm2, %v1334_v42 }
 0x23b   :  { %v1343_v3 = vpop.xlane.xlu1 %1342 }
 0x23c   :  { %1345 = vst.msk [vmem:[%s3194_s2] sm:$0xff] %vm1344_vm3, %v1343_v3 }

</bundles_post_ra>
